<compile_context>
chip_gen: v6e
topology: v6e:2x2x1
jax: 0.10.0
libtpu: 0.0.40
codegen_flags: <defaults>
</compile_context>

<pallas_src>
from functools import partial

import jax
import jax.numpy as jnp
from jax.experimental import pallas as pl
from jax.experimental.pallas import tpu as pltpu

RATE = 4          # channel reduction rate
NUMBER = 2        # window_number (=> NUMBER*NUMBER strided windows)
K_ECA = 7         # ECA conv1d kernel size
HALF = (K_ECA - 1) // 2


def _is_v5():
    try:
        kind = jax.devices()[0].device_kind.lower()
        return "v5" in kind
    except Exception:
        return False


# ------------------------------- Pallas kernel --------------------------------

def _mssra_kernel(x_ref, wrt_ref, brd_ref, wbig_ref, bd_ref, eca_ref,
                  wrc3_ref, brc_ref, pmat_ref, pmatT_ref, tmask_ref,
                  o_ref,
                  xv_ref, tap_ref, pdp_ref,
                  *, H, W, mid, n, pad, k_eca, split_dilations, compute_dtype):
    f32 = jnp.float32
    HW = H * W
    nwin = n * n
    half = (k_eca - 1) // 2
    P = mid + 2 * half                 # per-branch row stride in padded pooled buffer
    rows_y = 3 * mid + 4 * half        # rows of the stacked channel-conv output
    inv_win = 1.0 / float(HW // nwin)  # 1 / (Hn*Wn): strided-window pixel count

    # ---- 1) channelreduce (1x1 conv):  xr = Wred^T @ x + b  -> (mid, HW) ----
    x = x_ref[0].astype(compute_dtype)                               # (C, HW)
    xr = jnp.dot(wrt_ref[...], x, preferred_element_type=f32)        # (mid, HW) fp32
    xr = xr + brd_ref[...]

    # ---- 2) flat copy for shifted-tap extraction ----
    # Only the data region is written; the side pads are NEVER trusted (every
    # out-of-range lane is masked with jnp.where below), so no zeroing is
    # needed and scratch-persistence / megacore hazards are avoided.
    xv_ref[:, pad:pad + HW] = xr

    # ---- 3) build the 27-tap stack (3 dilations x 9 taps) in compute dtype ----
    # Tap (dy, dx) over flat pixel p is xv[:, pad + p + dy*W + dx]; validity
    # (vertical + horizontal) comes from the precomputed per-tap mask.
    for d_idx in range(3):
        dil = d_idx + 1
        for ky in range(3):
            for kx in range(3):
                dy, dx = (ky - 1) * dil, (kx - 1) * dil
                ti = d_idx * 9 + ky * 3 + kx
                off = pad + dy * W + dx
                t = xv_ref[:, off:off + HW]                          # (mid, HW) fp32
                if dy != 0 or dx != 0:
                    t = jnp.where(tmask_ref[ti:ti + 1, :] != 0.0, t, 0.0)
                tap_ref[ti * mid:(ti + 1) * mid, :] = t.astype(compute_dtype)

    # ---- 4) the three dilated 3x3 convs ----
    if split_dilations:
        # v5e (128x128 MXU): three per-dilation K=9*mid matmuls, no zero blocks.
        parts = []
        for d in range(3):
            wd = wbig_ref[d * mid:(d + 1) * mid, d * 9 * mid:(d + 1) * 9 * mid]
            td = tap_ref[d * 9 * mid:(d + 1) * 9 * mid, :]
            parts.append(jnp.dot(wd, td, preferred_element_type=f32))
        feat = jnp.concatenate(parts, axis=0) + bd_ref[...]          # (3*mid, HW)
    else:
        # v6e/v7x (256-wide MXU): ONE wide-K matmul against the block-diag weight.
        feat = jnp.dot(wbig_ref[...], tap_ref[...],
                       preferred_element_type=f32) + bd_ref[...]     # (3*mid, HW)

    # ---- 5) merged ECA across all 3 branches, fp32 throughout ----
    # window pooling as a matmul against the 0/1 membership matrix
    pooled = jnp.dot(feat.astype(compute_dtype), pmat_ref[...],
                     preferred_element_type=f32) * inv_win           # (3*mid, nwin)

    # stacked, per-branch zero-padded pooled buffer (tiny; re-zeroed each step
    # for megacore safety — a handful of sub-vreg stores)
    pdp_ref[...] = jnp.zeros((3 * P, nwin), f32)
    for d in range(3):
        pdp_ref[d * P + half:d * P + half + mid, :] = pooled[d * mid:(d + 1) * mid, :]

    # one stacked 7-tap channel conv with trace-time expanded per-row weights
    y = jnp.zeros((rows_y, nwin), f32)
    for k in range(k_eca):
        y = y + eca_ref[k] * pdp_ref[k:k + rows_y, :]

    # exact sigmoid (EUP exp dominates; exact divide is nearly free)
    scale_pad = 1.0 / (1.0 + jnp.exp(-y))                            # (rows_y, nwin)
    scale = jnp.concatenate(
        [scale_pad[d * P:d * P + mid, :] for d in range(3)], axis=0)  # (3*mid, nwin)

    # per-window scale -> per-pixel scale map, ONE matmul for all branches
    smap = jnp.dot(scale.astype(compute_dtype), pmatT_ref[...],
                   preferred_element_type=f32)                       # (3*mid, HW)

    # ---- 6) branch sum folded into channelrecover (1x1 conv) ----
    scaled = (feat * smap).astype(compute_dtype)                     # (3*mid, HW)
    out = jnp.dot(wrc3_ref[...], scaled,
                  preferred_element_type=f32) + brc_ref[...]         # (C, HW)
    o_ref[0] = out.astype(o_ref.dtype)


# --------------------------------- wrapper ------------------------------------

def mssra_forward(x_nchw, p, *, compute_dtype=jnp.bfloat16, split_dilations=None):
    B, C, H, W = x_nchw.shape
    assert C % RATE == 0 and H % NUMBER == 0 and W % NUMBER == 0
    mid = C // RATE
    n = NUMBER
    HW = H * W
    nwin = n * n
    half = HALF
    P = mid + 2 * half
    rows_y = 3 * mid + 4 * half
    pad = ((3 * W + 3 + 127) // 128) * 128      # lane padding for flat shifted taps
    assert pad >= 3 * W + 3

    if split_dilations is None:
        split_dilations = _is_v5()

    x_flat = x_nchw.reshape(B, C, HW)           # NCHW is already (channels, pixels)

    # ---- trace-time parameter packing (batch independent, tiny) ----
    w_redT = p['w_red'].T.astype(compute_dtype)                       # (mid, C)
    b_red = p['b_red'].reshape(mid, 1).astype(jnp.float32)

    # block-diagonal weight for the fused dilated convs: (3*mid, 27*mid)
    #   row = d*mid + c_out ; col = (d*9 + tap)*mid + c_in
    wd = jnp.stack([p['w_d1'], p['w_d2'], p['w_d3']], axis=0)         # (3, 9, ci, co)
    wd_t = jnp.transpose(wd, (0, 3, 1, 2)).reshape(3, mid, 9 * mid)   # (3, co, 9*ci)
    wbig = jnp.zeros((3 * mid, 27 * mid), jnp.float32)
    for d in range(3):
        wbig = wbig.at[d * mid:(d + 1) * mid,
                       d * 9 * mid:(d + 1) * 9 * mid].set(wd_t[d])
    wbig = wbig.astype(compute_dtype)
    b_d = jnp.concatenate([p['b_d1'], p['b_d2'], p['b_d3']]
                          ).reshape(3 * mid, 1).astype(jnp.float32)

    # ECA weights expanded to the stacked padded-row layout: (K, rows_y, nwin)
    eca_t = jnp.transpose(p['eca_w'], (0, 2, 1)).astype(jnp.float32)  # (3, K, nwin)
    eca_exp = jnp.zeros((K_ECA, rows_y, nwin), jnp.float32)
    for d in range(3):
        blk = jnp.broadcast_to(eca_t[d][:, None, :], (K_ECA, mid, nwin))
        eca_exp = eca_exp.at[:, d * P:d * P + mid, :].set(blk)

    # channelrecover weight replicated over the 3 branches: (C, 3*mid)
    w_rec3 = jnp.tile(p['w_rec'].T, (1, 3)).astype(compute_dtype)
    b_rec = p['b_rec'].reshape(C, 1).astype(jnp.float32)

    # strided-window membership matrix (window id = (h%n)*n + (w%n))
    hh = jnp.arange(H).reshape(H, 1)
    ww = jnp.arange(W).reshape(1, W)
    win_id = ((hh % n) * n + (ww % n)).reshape(HW)
    pmat = (win_id[:, None] == jnp.arange(nwin)[None, :]).astype(compute_dtype)
    pmatT = jnp.transpose(pmat)                                       # (nwin, HW)

    # per-tap validity masks (vertical + horizontal), precomputed once: (27, HW)
    hh_f = jnp.arange(HW) // W
    ww_f = jnp.arange(HW) % W
    mrows = []
    for d_idx in range(3):
        dil = d_idx + 1
        for ky in range(3):
            for kx in range(3):
                dy, dx = (ky - 1) * dil, (kx - 1) * dil
                ok = ((hh_f + dy >= 0) & (hh_f + dy < H) &
                      (ww_f + dx >= 0) & (ww_f + dx < W))
                mrows.append(ok.astype(jnp.float32))
    tmask = jnp.stack(mrows, axis=0)

    # ---- explicit VMEM budget (keep headroom for v7x's 64 MiB) ----
    cbytes = jnp.dtype(compute_dtype).itemsize
    vmem_est = (
        2 * 2 * C * HW * 4                       # double-buffered x / out blocks
        + mid * (HW + 2 * pad) * 4               # xv scratch (fp32)
        + 27 * mid * HW * cbytes                 # tap scratch (compute dtype)
        + 3 * P * nwin * 4                       # padded pooled scratch
        + 8 * 3 * mid * HW * 4                   # fp32 temporaries (feat/smap/...)
        + 2 * (27 * HW * 4 + 2 * HW * nwin * cbytes
               + 3 * mid * 27 * mid * cbytes + C * 3 * mid * cbytes + mid * C * cbytes)
    )
    vmem_limit = int(min(100 * 2 ** 20, max(32 * 2 ** 20, 2 * vmem_est)))

    kern = partial(_mssra_kernel, H=H, W=W, mid=mid, n=n, pad=pad,
                   k_eca=K_ECA, split_dilations=split_dilations,
                   compute_dtype=compute_dtype)

    out = pl.pallas_call(
        kern,
        out_shape=jax.ShapeDtypeStruct((B, C, HW), x_nchw.dtype),
        grid=(B,),
        in_specs=[
            pl.BlockSpec((1, C, HW), lambda b: (b, 0, 0)),            # x (per batch)
            pl.BlockSpec((mid, C), lambda b: (0, 0)),                 # w_redT
            pl.BlockSpec((mid, 1), lambda b: (0, 0)),                 # b_red
            pl.BlockSpec((3 * mid, 27 * mid), lambda b: (0, 0)),      # wbig
            pl.BlockSpec((3 * mid, 1), lambda b: (0, 0)),             # b_d
            pl.BlockSpec((K_ECA, rows_y, nwin), lambda b: (0, 0, 0)),  # eca_exp
            pl.BlockSpec((C, 3 * mid), lambda b: (0, 0)),             # w_rec3
            pl.BlockSpec((C, 1), lambda b: (0, 0)),                   # b_rec
            pl.BlockSpec((HW, nwin), lambda b: (0, 0)),               # pmat
            pl.BlockSpec((nwin, HW), lambda b: (0, 0)),               # pmatT
            pl.BlockSpec((27, HW), lambda b: (0, 0)),                 # tap masks
        ],
        out_specs=pl.BlockSpec((1, C, HW), lambda b: (b, 0, 0)),
        scratch_shapes=[
            pltpu.VMEM((mid, HW + 2 * pad), jnp.float32),             # padded flat xr
            pltpu.VMEM((27 * mid, HW), compute_dtype),                # tap stack (bf16)
            pltpu.VMEM((3 * P, nwin), jnp.float32),                   # padded pooled
        ],
        compiler_params=pltpu.CompilerParams(
            dimension_semantics=("parallel",),
            vmem_limit_bytes=vmem_limit),
    )(x_flat, w_redT, b_red, wbig, b_d, eca_exp, w_rec3, b_rec, pmat, pmatT, tmask)

    return out.reshape(B, C, H, W)


# ------------------------- deterministic parameters ---------------------------

def init_params(key, channel):
    mid = channel // RATE
    nwin = NUMBER * NUMBER
    k = jax.random.split(key, 11)

    def w(kk, shape, scale=0.1):
        return scale * jax.random.normal(kk, shape, dtype=jnp.float32)

    return dict(
        w_red=w(k[0], (channel, mid)),  b_red=w(k[1], (mid,), 0.01),
        w_d1=w(k[2], (9, mid, mid)),    b_d1=w(k[3], (mid,), 0.01),
        w_d2=w(k[4], (9, mid, mid)),    b_d2=w(k[5], (mid,), 0.01),
        w_d3=w(k[6], (9, mid, mid)),    b_d3=w(k[7], (mid,), 0.01),
        w_rec=w(k[8], (mid, channel)),  b_rec=w(k[9], (channel,), 0.01),
        eca_w=w(k[10], (3, nwin, K_ECA), 0.5),
    )


# ------------------------------ pure-JAX reference ----------------------------

def reference_forward(x_nchw, p):
    B, C, H, W = x_nchw.shape
    mid = C // RATE
    n = NUMBER
    Hn, Wn = H // n, W // n
    xh = jnp.transpose(x_nchw, (0, 2, 3, 1))
    xr = jnp.einsum('bhwc,cm->bhwm', xh, p['w_red']) + p['b_red']

    def dconv_ref(z, w9, b, d):
        w = w9.reshape(3, 3, mid, mid)   # HWIO
        out = jax.lax.conv_general_dilated(
            z, w, window_strides=(1, 1), padding=((d, d), (d, d)),
            rhs_dilation=(d, d), dimension_numbers=('NHWC', 'HWIO', 'NHWC'))
        return out + b

    feats = [dconv_ref(xr, p['w_d1'], p['b_d1'], 1),
             dconv_ref(xr, p['w_d2'], p['b_d2'], 2),
             dconv_ref(xr, p['w_d3'], p['b_d3'], 3)]

    def eca_apply(fw, wvec):
        pooled = fw.mean(axis=(1, 2))                          # (B, mid)
        padded = jnp.pad(pooled, ((0, 0), (HALF, HALF)))
        y = sum(wvec[k] * padded[:, k:k + mid] for k in range(K_ECA))
        return fw * jax.nn.sigmoid(y)[:, None, None, :]

    acc = jnp.zeros((B, H, W, mid), jnp.float32)
    for L in range(3):
        fp = feats[L].reshape(B, Hn, n, Wn, n, mid).transpose(0, 2, 4, 1, 3, 5)
        outw = jnp.zeros_like(fp)
        for i in range(n * n):
            h1, w1 = i // n, i % n
            outw = outw.at[:, h1, w1].set(eca_apply(fp[:, h1, w1], p['eca_w'][L, i]))
        acc = acc + outw.transpose(0, 3, 1, 4, 2, 5).reshape(B, H, W, mid)

    out = jnp.einsum('bhwm,mc->bhwc', acc, p['w_rec']) + p['b_rec']
    return jnp.transpose(out, (0, 3, 1, 2))


# ----------------------------------- main -------------------------------------

if __name__ == "__main__":
    B, C, H, W = 2, 32, 16, 16     # channel=32 -> mid=8, number=2 -> 4 windows of 8x8
    key = jax.random.PRNGKey(0)
    kx, kp = jax.random.split(key)
    x = jax.random.normal(kx, (B, C, H, W), dtype=jnp.float32)
    params = init_params(kp, C)

    ref = jax.block_until_ready(reference_forward(x, params))

    # exact-math path (fp32 matmul operands)
    fwd_f32 = jax.jit(partial(mssra_forward, compute_dtype=jnp.float32))
    out32 = jax.block_until_ready(fwd_f32(x, params))
    assert out32.shape == (B, C, H, W)
    err32 = float(jnp.max(jnp.abs(out32 - ref)))
    assert err32 < 2e-2, f"fp32 path max abs error too large: {err32}"

    # default fast path (bf16 matmul operands / tap storage, fp32 accumulation)
    fwd_bf16 = jax.jit(partial(mssra_forward, compute_dtype=jnp.bfloat16))
    out16 = jax.block_until_ready(fwd_bf16(x, params))
    assert out16.shape == (B, C, H, W)
    err16 = float(jnp.max(jnp.abs(out16 - ref)))
    assert err16 < 6e-2, f"bf16 path max abs error too large: {err16}"

    print("KERNEL_OK")
</pallas_src>

<mosaic_0001>
module attributes {stable_mosaic.version = 11 : i64} {
  func.func @_mssra_kernel(%arg0: i32, %arg1: memref<1x32x256xf32, #tpu.memory_space<vmem>>, %arg2: memref<8x32xf32, #tpu.memory_space<vmem>>, %arg3: memref<8x1xf32, #tpu.memory_space<vmem>>, %arg4: memref<24x216xf32, #tpu.memory_space<vmem>>, %arg5: memref<24x1xf32, #tpu.memory_space<vmem>>, %arg6: memref<7x36x4xf32, #tpu.memory_space<vmem>>, %arg7: memref<32x24xf32, #tpu.memory_space<vmem>>, %arg8: memref<32x1xf32, #tpu.memory_space<vmem>>, %arg9: memref<256x4xf32, #tpu.memory_space<vmem>>, %arg10: memref<4x256xf32, #tpu.memory_space<vmem>>, %arg11: memref<27x256xf32, #tpu.memory_space<vmem>>, %arg12: memref<1x32x256xf32, #tpu.memory_space<vmem>>, %arg13: memref<8x512xf32, #tpu.memory_space<vmem>>, %arg14: memref<216x256xf32, #tpu.memory_space<vmem>>, %arg15: memref<42x4xf32, #tpu.memory_space<vmem>>) attributes {dimension_semantics = [#tpu.dimension_semantics<parallel>], iteration_bounds = array<i64: 2>, scalar_prefetch = 0 : i64, scratch_operands = 3 : i64, tpu.core_type = #tpu.core_type<tc>, window_params = [{transform_indices = @transform_0, window_bounds = array<i64: 1, 32, 256>}, {pipeline_mode = #tpu.pipeline_mode<synchronous>, transform_indices = @transform_1, window_bounds = array<i64: 8, 32>}, {pipeline_mode = #tpu.pipeline_mode<synchronous>, transform_indices = @transform_2, window_bounds = array<i64: 8, 1>}, {pipeline_mode = #tpu.pipeline_mode<synchronous>, transform_indices = @transform_3, window_bounds = array<i64: 24, 216>}, {pipeline_mode = #tpu.pipeline_mode<synchronous>, transform_indices = @transform_4, window_bounds = array<i64: 24, 1>}, {pipeline_mode = #tpu.pipeline_mode<synchronous>, transform_indices = @transform_5, window_bounds = array<i64: 7, 36, 4>}, {pipeline_mode = #tpu.pipeline_mode<synchronous>, transform_indices = @transform_6, window_bounds = array<i64: 32, 24>}, {pipeline_mode = #tpu.pipeline_mode<synchronous>, transform_indices = @transform_7, window_bounds = array<i64: 32, 1>}, {pipeline_mode = #tpu.pipeline_mode<synchronous>, transform_indices = @transform_8, window_bounds = array<i64: 256, 4>}, {pipeline_mode = #tpu.pipeline_mode<synchronous>, transform_indices = @transform_9, window_bounds = array<i64: 4, 256>}, {pipeline_mode = #tpu.pipeline_mode<synchronous>, transform_indices = @transform_10, window_bounds = array<i64: 27, 256>}, {transform_indices = @transform_11, window_bounds = array<i64: 1, 32, 256>}]} {
    %c0 = arith.constant 0 : index
    %c0_0 = arith.constant 0 : index
    %c0_1 = arith.constant 0 : index
    %0 = vector.load %arg1[%c0, %c0_0, %c0_1] : memref<1x32x256xf32, #tpu.memory_space<vmem>>, vector<1x32x256xf32>
    %1 = vector.shape_cast %0 : vector<1x32x256xf32> to vector<32x256xf32>
    %c0_2 = arith.constant 0 : index
    %c0_3 = arith.constant 0 : index
    %2 = vector.load %arg2[%c0_2, %c0_3] : memref<8x32xf32, #tpu.memory_space<vmem>>, vector<8x32xf32>
    %cst = arith.constant dense<0.000000e+00> : vector<8x256xf32>
    %3 = tpu.matmul %2, %1, %cst {dimension_numbers = #tpu.dot_dimension_numbers<[1], [0], [0], [1], [0, 0, 1, 1], [], []>} : vector<8x32xf32>, vector<32x256xf32>, vector<8x256xf32> -> vector<8x256xf32>
    %c0_4 = arith.constant 0 : index
    %c0_5 = arith.constant 0 : index
    %4 = vector.load %arg3[%c0_4, %c0_5] : memref<8x1xf32, #tpu.memory_space<vmem>>, vector<8x1xf32>
    %5 = vector.broadcast %4 : vector<8x1xf32> to vector<8x256xf32>
    %6 = arith.addf %3, %5 : vector<8x256xf32>
    %c0_6 = arith.constant 0 : index
    %c128 = arith.constant 128 : index
    %7 = vector.load %arg13[%c0_6, %c128] : memref<8x512xf32, #tpu.memory_space<vmem>>, vector<8x256xf32>
    tpu.vector_store %arg13[%c0_6, %c128], %6 {strides = array<i32>} : memref<8x512xf32, #tpu.memory_space<vmem>>, vector<8x256xf32>,
    %c0_7 = arith.constant 0 : index
    %c111 = arith.constant 111 : index
    %8 = vector.load %arg13[%c0_7, %c111] : memref<8x512xf32, #tpu.memory_space<vmem>>, vector<8x256xf32>
    %c0_8 = arith.constant 0 : index
    %c0_9 = arith.constant 0 : index
    %9 = vector.load %arg11[%c0_8, %c0_9] : memref<27x256xf32, #tpu.memory_space<vmem>>, vector<1x256xf32>
    %cst_10 = arith.constant 0.000000e+00 : f32
    %10 = vector.broadcast %cst_10 : f32 to vector<1x256xf32>
    %11 = arith.cmpf one, %9, %10 : vector<1x256xf32>
    %cst_11 = arith.constant 0.000000e+00 : f32
    %12 = vector.shape_cast %11 : vector<1x256xi1> to vector<1x256xi1>
    %13 = vector.broadcast %12 : vector<1x256xi1> to vector<8x256xi1>
    %14 = vector.broadcast %cst_11 : f32 to vector<8x256xf32>
    %15 = arith.select %13, %8, %14 : vector<8x256xi1>, vector<8x256xf32>
    %c0_12 = arith.constant 0 : index
    %c0_13 = arith.constant 0 : index
    %16 = vector.load %arg14[%c0_12, %c0_13] : memref<216x256xf32, #tpu.memory_space<vmem>>, vector<8x256xf32>
    tpu.vector_store %arg14[%c0_12, %c0_13], %15 {strides = array<i32>} : memref<216x256xf32, #tpu.memory_space<vmem>>, vector<8x256xf32>,
    %c0_14 = arith.constant 0 : index
    %c112 = arith.constant 112 : index
    %17 = vector.load %arg13[%c0_14, %c112] : memref<8x512xf32, #tpu.memory_space<vmem>>, vector<8x256xf32>
    %c1 = arith.constant 1 : index
    %c0_15 = arith.constant 0 : index
    %18 = vector.load %arg11[%c1, %c0_15] : memref<27x256xf32, #tpu.memory_space<vmem>>, vector<1x256xf32>
    %cst_16 = arith.constant 0.000000e+00 : f32
    %19 = vector.broadcast %cst_16 : f32 to vector<1x256xf32>
    %20 = arith.cmpf one, %18, %19 : vector<1x256xf32>
    %cst_17 = arith.constant 0.000000e+00 : f32
    %21 = vector.shape_cast %20 : vector<1x256xi1> to vector<1x256xi1>
    %22 = vector.broadcast %21 : vector<1x256xi1> to vector<8x256xi1>
    %23 = vector.broadcast %cst_17 : f32 to vector<8x256xf32>
    %24 = arith.select %22, %17, %23 : vector<8x256xi1>, vector<8x256xf32>
    %c8 = arith.constant 8 : index
    %c0_18 = arith.constant 0 : index
    %25 = vector.load %arg14[%c8, %c0_18] : memref<216x256xf32, #tpu.memory_space<vmem>>, vector<8x256xf32>
    tpu.vector_store %arg14[%c8, %c0_18], %24 {strides = array<i32>} : memref<216x256xf32, #tpu.memory_space<vmem>>, vector<8x256xf32>,
    %c0_19 = arith.constant 0 : index
    %c113 = arith.constant 113 : index
    %26 = vector.load %arg13[%c0_19, %c113] : memref<8x512xf32, #tpu.memory_space<vmem>>, vector<8x256xf32>
    %c2 = arith.constant 2 : index
    %c0_20 = arith.constant 0 : index
    %27 = vector.load %arg11[%c2, %c0_20] : memref<27x256xf32, #tpu.memory_space<vmem>>, vector<1x256xf32>
    %cst_21 = arith.constant 0.000000e+00 : f32
    %28 = vector.broadcast %cst_21 : f32 to vector<1x256xf32>
    %29 = arith.cmpf one, %27, %28 : vector<1x256xf32>
    %cst_22 = arith.constant 0.000000e+00 : f32
    %30 = vector.shape_cast %29 : vector<1x256xi1> to vector<1x256xi1>
    %31 = vector.broadcast %30 : vector<1x256xi1> to vector<8x256xi1>
    %32 = vector.broadcast %cst_22 : f32 to vector<8x256xf32>
    %33 = arith.select %31, %26, %32 : vector<8x256xi1>, vector<8x256xf32>
    %c16 = arith.constant 16 : index
    %c0_23 = arith.constant 0 : index
    %34 = vector.load %arg14[%c16, %c0_23] : memref<216x256xf32, #tpu.memory_space<vmem>>, vector<8x256xf32>
    tpu.vector_store %arg14[%c16, %c0_23], %33 {strides = array<i32>} : memref<216x256xf32, #tpu.memory_space<vmem>>, vector<8x256xf32>,
    %c0_24 = arith.constant 0 : index
    %c127 = arith.constant 127 : index
    %35 = vector.load %arg13[%c0_24, %c127] : memref<8x512xf32, #tpu.memory_space<vmem>>, vector<8x256xf32>
    %c3 = arith.constant 3 : index
    %c0_25 = arith.constant 0 : index
    %36 = vector.load %arg11[%c3, %c0_25] : memref<27x256xf32, #tpu.memory_space<vmem>>, vector<1x256xf32>
    %cst_26 = arith.constant 0.000000e+00 : f32
    %37 = vector.broadcast %cst_26 : f32 to vector<1x256xf32>
    %38 = arith.cmpf one, %36, %37 : vector<1x256xf32>
    %cst_27 = arith.constant 0.000000e+00 : f32
    %39 = vector.shape_cast %38 : vector<1x256xi1> to vector<1x256xi1>
    %40 = vector.broadcast %39 : vector<1x256xi1> to vector<8x256xi1>
    %41 = vector.broadcast %cst_27 : f32 to vector<8x256xf32>
    %42 = arith.select %40, %35, %41 : vector<8x256xi1>, vector<8x256xf32>
    %c24 = arith.constant 24 : index
    %c0_28 = arith.constant 0 : index
    %43 = vector.load %arg14[%c24, %c0_28] : memref<216x256xf32, #tpu.memory_space<vmem>>, vector<8x256xf32>
    tpu.vector_store %arg14[%c24, %c0_28], %42 {strides = array<i32>} : memref<216x256xf32, #tpu.memory_space<vmem>>, vector<8x256xf32>,
    %c0_29 = arith.constant 0 : index
    %c128_30 = arith.constant 128 : index
    %44 = vector.load %arg13[%c0_29, %c128_30] : memref<8x512xf32, #tpu.memory_space<vmem>>, vector<8x256xf32>
    %c32 = arith.constant 32 : index
    %c0_31 = arith.constant 0 : index
    %45 = vector.load %arg14[%c32, %c0_31] : memref<216x256xf32, #tpu.memory_space<vmem>>, vector<8x256xf32>
    tpu.vector_store %arg14[%c32, %c0_31], %44 {strides = array<i32>} : memref<216x256xf32, #tpu.memory_space<vmem>>, vector<8x256xf32>,
    %c0_32 = arith.constant 0 : index
    %c129 = arith.constant 129 : index
    %46 = vector.load %arg13[%c0_32, %c129] : memref<8x512xf32, #tpu.memory_space<vmem>>, vector<8x256xf32>
    %c5 = arith.constant 5 : index
    %c0_33 = arith.constant 0 : index
    %47 = vector.load %arg11[%c5, %c0_33] : memref<27x256xf32, #tpu.memory_space<vmem>>, vector<1x256xf32>
    %cst_34 = arith.constant 0.000000e+00 : f32
    %48 = vector.broadcast %cst_34 : f32 to vector<1x256xf32>
    %49 = arith.cmpf one, %47, %48 : vector<1x256xf32>
    %cst_35 = arith.constant 0.000000e+00 : f32
    %50 = vector.shape_cast %49 : vector<1x256xi1> to vector<1x256xi1>
    %51 = vector.broadcast %50 : vector<1x256xi1> to vector<8x256xi1>
    %52 = vector.broadcast %cst_35 : f32 to vector<8x256xf32>
    %53 = arith.select %51, %46, %52 : vector<8x256xi1>, vector<8x256xf32>
    %c40 = arith.constant 40 : index
    %c0_36 = arith.constant 0 : index
    %54 = vector.load %arg14[%c40, %c0_36] : memref<216x256xf32, #tpu.memory_space<vmem>>, vector<8x256xf32>
    tpu.vector_store %arg14[%c40, %c0_36], %53 {strides = array<i32>} : memref<216x256xf32, #tpu.memory_space<vmem>>, vector<8x256xf32>,
    %c0_37 = arith.constant 0 : index
    %c143 = arith.constant 143 : index
    %55 = vector.load %arg13[%c0_37, %c143] : memref<8x512xf32, #tpu.memory_space<vmem>>, vector<8x256xf32>
    %c6 = arith.constant 6 : index
    %c0_38 = arith.constant 0 : index
    %56 = vector.load %arg11[%c6, %c0_38] : memref<27x256xf32, #tpu.memory_space<vmem>>, vector<1x256xf32>
    %cst_39 = arith.constant 0.000000e+00 : f32
    %57 = vector.broadcast %cst_39 : f32 to vector<1x256xf32>
    %58 = arith.cmpf one, %56, %57 : vector<1x256xf32>
    %cst_40 = arith.constant 0.000000e+00 : f32
    %59 = vector.shape_cast %58 : vector<1x256xi1> to vector<1x256xi1>
    %60 = vector.broadcast %59 : vector<1x256xi1> to vector<8x256xi1>
    %61 = vector.broadcast %cst_40 : f32 to vector<8x256xf32>
    %62 = arith.select %60, %55, %61 : vector<8x256xi1>, vector<8x256xf32>
    %c48 = arith.constant 48 : index
    %c0_41 = arith.constant 0 : index
    %63 = vector.load %arg14[%c48, %c0_41] : memref<216x256xf32, #tpu.memory_space<vmem>>, vector<8x256xf32>
    tpu.vector_store %arg14[%c48, %c0_41], %62 {strides = array<i32>} : memref<216x256xf32, #tpu.memory_space<vmem>>, vector<8x256xf32>,
    %c0_42 = arith.constant 0 : index
    %c144 = arith.constant 144 : index
    %64 = vector.load %arg13[%c0_42, %c144] : memref<8x512xf32, #tpu.memory_space<vmem>>, vector<8x256xf32>
    %c7 = arith.constant 7 : index
    %c0_43 = arith.constant 0 : index
    %65 = vector.load %arg11[%c7, %c0_43] : memref<27x256xf32, #tpu.memory_space<vmem>>, vector<1x256xf32>
    %cst_44 = arith.constant 0.000000e+00 : f32
    %66 = vector.broadcast %cst_44 : f32 to vector<1x256xf32>
    %67 = arith.cmpf one, %65, %66 : vector<1x256xf32>
    %cst_45 = arith.constant 0.000000e+00 : f32
    %68 = vector.shape_cast %67 : vector<1x256xi1> to vector<1x256xi1>
    %69 = vector.broadcast %68 : vector<1x256xi1> to vector<8x256xi1>
    %70 = vector.broadcast %cst_45 : f32 to vector<8x256xf32>
    %71 = arith.select %69, %64, %70 : vector<8x256xi1>, vector<8x256xf32>
    %c56 = arith.constant 56 : index
    %c0_46 = arith.constant 0 : index
    %72 = vector.load %arg14[%c56, %c0_46] : memref<216x256xf32, #tpu.memory_space<vmem>>, vector<8x256xf32>
    tpu.vector_store %arg14[%c56, %c0_46], %71 {strides = array<i32>} : memref<216x256xf32, #tpu.memory_space<vmem>>, vector<8x256xf32>,
    %c0_47 = arith.constant 0 : index
    %c145 = arith.constant 145 : index
    %73 = vector.load %arg13[%c0_47, %c145] : memref<8x512xf32, #tpu.memory_space<vmem>>, vector<8x256xf32>
    %c8_48 = arith.constant 8 : index
    %c0_49 = arith.constant 0 : index
    %74 = vector.load %arg11[%c8_48, %c0_49] : memref<27x256xf32, #tpu.memory_space<vmem>>, vector<1x256xf32>
    %cst_50 = arith.constant 0.000000e+00 : f32
    %75 = vector.broadcast %cst_50 : f32 to vector<1x256xf32>
    %76 = arith.cmpf one, %74, %75 : vector<1x256xf32>
    %cst_51 = arith.constant 0.000000e+00 : f32
    %77 = vector.shape_cast %76 : vector<1x256xi1> to vector<1x256xi1>
    %78 = vector.broadcast %77 : vector<1x256xi1> to vector<8x256xi1>
    %79 = vector.broadcast %cst_51 : f32 to vector<8x256xf32>
    %80 = arith.select %78, %73, %79 : vector<8x256xi1>, vector<8x256xf32>
    %c64 = arith.constant 64 : index
    %c0_52 = arith.constant 0 : index
    %81 = vector.load %arg14[%c64, %c0_52] : memref<216x256xf32, #tpu.memory_space<vmem>>, vector<8x256xf32>
    tpu.vector_store %arg14[%c64, %c0_52], %80 {strides = array<i32>} : memref<216x256xf32, #tpu.memory_space<vmem>>, vector<8x256xf32>,
    %c0_53 = arith.constant 0 : index
    %c94 = arith.constant 94 : index
    %82 = vector.load %arg13[%c0_53, %c94] : memref<8x512xf32, #tpu.memory_space<vmem>>, vector<8x256xf32>
    %c9 = arith.constant 9 : index
    %c0_54 = arith.constant 0 : index
    %83 = vector.load %arg11[%c9, %c0_54] : memref<27x256xf32, #tpu.memory_space<vmem>>, vector<1x256xf32>
    %cst_55 = arith.constant 0.000000e+00 : f32
    %84 = vector.broadcast %cst_55 : f32 to vector<1x256xf32>
    %85 = arith.cmpf one, %83, %84 : vector<1x256xf32>
    %cst_56 = arith.constant 0.000000e+00 : f32
    %86 = vector.shape_cast %85 : vector<1x256xi1> to vector<1x256xi1>
    %87 = vector.broadcast %86 : vector<1x256xi1> to vector<8x256xi1>
    %88 = vector.broadcast %cst_56 : f32 to vector<8x256xf32>
    %89 = arith.select %87, %82, %88 : vector<8x256xi1>, vector<8x256xf32>
    %c72 = arith.constant 72 : index
    %c0_57 = arith.constant 0 : index
    %90 = vector.load %arg14[%c72, %c0_57] : memref<216x256xf32, #tpu.memory_space<vmem>>, vector<8x256xf32>
    tpu.vector_store %arg14[%c72, %c0_57], %89 {strides = array<i32>} : memref<216x256xf32, #tpu.memory_space<vmem>>, vector<8x256xf32>,
    %c0_58 = arith.constant 0 : index
    %c96 = arith.constant 96 : index
    %91 = vector.load %arg13[%c0_58, %c96] : memref<8x512xf32, #tpu.memory_space<vmem>>, vector<8x256xf32>
    %c10 = arith.constant 10 : index
    %c0_59 = arith.constant 0 : index
    %92 = vector.load %arg11[%c10, %c0_59] : memref<27x256xf32, #tpu.memory_space<vmem>>, vector<1x256xf32>
    %cst_60 = arith.constant 0.000000e+00 : f32
    %93 = vector.broadcast %cst_60 : f32 to vector<1x256xf32>
    %94 = arith.cmpf one, %92, %93 : vector<1x256xf32>
    %cst_61 = arith.constant 0.000000e+00 : f32
    %95 = vector.shape_cast %94 : vector<1x256xi1> to vector<1x256xi1>
    %96 = vector.broadcast %95 : vector<1x256xi1> to vector<8x256xi1>
    %97 = vector.broadcast %cst_61 : f32 to vector<8x256xf32>
    %98 = arith.select %96, %91, %97 : vector<8x256xi1>, vector<8x256xf32>
    %c80 = arith.constant 80 : index
    %c0_62 = arith.constant 0 : index
    %99 = vector.load %arg14[%c80, %c0_62] : memref<216x256xf32, #tpu.memory_space<vmem>>, vector<8x256xf32>
    tpu.vector_store %arg14[%c80, %c0_62], %98 {strides = array<i32>} : memref<216x256xf32, #tpu.memory_space<vmem>>, vector<8x256xf32>,
    %c0_63 = arith.constant 0 : index
    %c98 = arith.constant 98 : index
    %100 = vector.load %arg13[%c0_63, %c98] : memref<8x512xf32, #tpu.memory_space<vmem>>, vector<8x256xf32>
    %c11 = arith.constant 11 : index
    %c0_64 = arith.constant 0 : index
    %101 = vector.load %arg11[%c11, %c0_64] : memref<27x256xf32, #tpu.memory_space<vmem>>, vector<1x256xf32>
    %cst_65 = arith.constant 0.000000e+00 : f32
    %102 = vector.broadcast %cst_65 : f32 to vector<1x256xf32>
    %103 = arith.cmpf one, %101, %102 : vector<1x256xf32>
    %cst_66 = arith.constant 0.000000e+00 : f32
    %104 = vector.shape_cast %103 : vector<1x256xi1> to vector<1x256xi1>
    %105 = vector.broadcast %104 : vector<1x256xi1> to vector<8x256xi1>
    %106 = vector.broadcast %cst_66 : f32 to vector<8x256xf32>
    %107 = arith.select %105, %100, %106 : vector<8x256xi1>, vector<8x256xf32>
    %c88 = arith.constant 88 : index
    %c0_67 = arith.constant 0 : index
    %108 = vector.load %arg14[%c88, %c0_67] : memref<216x256xf32, #tpu.memory_space<vmem>>, vector<8x256xf32>
    tpu.vector_store %arg14[%c88, %c0_67], %107 {strides = array<i32>} : memref<216x256xf32, #tpu.memory_space<vmem>>, vector<8x256xf32>,
    %c0_68 = arith.constant 0 : index
    %c126 = arith.constant 126 : index
    %109 = vector.load %arg13[%c0_68, %c126] : memref<8x512xf32, #tpu.memory_space<vmem>>, vector<8x256xf32>
    %c12 = arith.constant 12 : index
    %c0_69 = arith.constant 0 : index
    %110 = vector.load %arg11[%c12, %c0_69] : memref<27x256xf32, #tpu.memory_space<vmem>>, vector<1x256xf32>
    %cst_70 = arith.constant 0.000000e+00 : f32
    %111 = vector.broadcast %cst_70 : f32 to vector<1x256xf32>
    %112 = arith.cmpf one, %110, %111 : vector<1x256xf32>
    %cst_71 = arith.constant 0.000000e+00 : f32
    %113 = vector.shape_cast %112 : vector<1x256xi1> to vector<1x256xi1>
    %114 = vector.broadcast %113 : vector<1x256xi1> to vector<8x256xi1>
    %115 = vector.broadcast %cst_71 : f32 to vector<8x256xf32>
    %116 = arith.select %114, %109, %115 : vector<8x256xi1>, vector<8x256xf32>
    %c96_72 = arith.constant 96 : index
    %c0_73 = arith.constant 0 : index
    %117 = vector.load %arg14[%c96_72, %c0_73] : memref<216x256xf32, #tpu.memory_space<vmem>>, vector<8x256xf32>
    tpu.vector_store %arg14[%c96_72, %c0_73], %116 {strides = array<i32>} : memref<216x256xf32, #tpu.memory_space<vmem>>, vector<8x256xf32>,
    %c0_74 = arith.constant 0 : index
    %c128_75 = arith.constant 128 : index
    %118 = vector.load %arg13[%c0_74, %c128_75] : memref<8x512xf32, #tpu.memory_space<vmem>>, vector<8x256xf32>
    %c104 = arith.constant 104 : index
    %c0_76 = arith.constant 0 : index
    %119 = vector.load %arg14[%c104, %c0_76] : memref<216x256xf32, #tpu.memory_space<vmem>>, vector<8x256xf32>
    tpu.vector_store %arg14[%c104, %c0_76], %118 {strides = array<i32>} : memref<216x256xf32, #tpu.memory_space<vmem>>, vector<8x256xf32>,
    %c0_77 = arith.constant 0 : index
    %c130 = arith.constant 130 : index
    %120 = vector.load %arg13[%c0_77, %c130] : memref<8x512xf32, #tpu.memory_space<vmem>>, vector<8x256xf32>
    %c14 = arith.constant 14 : index
    %c0_78 = arith.constant 0 : index
    %121 = vector.load %arg11[%c14, %c0_78] : memref<27x256xf32, #tpu.memory_space<vmem>>, vector<1x256xf32>
    %cst_79 = arith.constant 0.000000e+00 : f32
    %122 = vector.broadcast %cst_79 : f32 to vector<1x256xf32>
    %123 = arith.cmpf one, %121, %122 : vector<1x256xf32>
    %cst_80 = arith.constant 0.000000e+00 : f32
    %124 = vector.shape_cast %123 : vector<1x256xi1> to vector<1x256xi1>
    %125 = vector.broadcast %124 : vector<1x256xi1> to vector<8x256xi1>
    %126 = vector.broadcast %cst_80 : f32 to vector<8x256xf32>
    %127 = arith.select %125, %120, %126 : vector<8x256xi1>, vector<8x256xf32>
    %c112_81 = arith.constant 112 : index
    %c0_82 = arith.constant 0 : index
    %128 = vector.load %arg14[%c112_81, %c0_82] : memref<216x256xf32, #tpu.memory_space<vmem>>, vector<8x256xf32>
    tpu.vector_store %arg14[%c112_81, %c0_82], %127 {strides = array<i32>} : memref<216x256xf32, #tpu.memory_space<vmem>>, vector<8x256xf32>,
    %c0_83 = arith.constant 0 : index
    %c158 = arith.constant 158 : index
    %129 = vector.load %arg13[%c0_83, %c158] : memref<8x512xf32, #tpu.memory_space<vmem>>, vector<8x256xf32>
    %c15 = arith.constant 15 : index
    %c0_84 = arith.constant 0 : index
    %130 = vector.load %arg11[%c15, %c0_84] : memref<27x256xf32, #tpu.memory_space<vmem>>, vector<1x256xf32>
    %cst_85 = arith.constant 0.000000e+00 : f32
    %131 = vector.broadcast %cst_85 : f32 to vector<1x256xf32>
    %132 = arith.cmpf one, %130, %131 : vector<1x256xf32>
    %cst_86 = arith.constant 0.000000e+00 : f32
    %133 = vector.shape_cast %132 : vector<1x256xi1> to vector<1x256xi1>
    %134 = vector.broadcast %133 : vector<1x256xi1> to vector<8x256xi1>
    %135 = vector.broadcast %cst_86 : f32 to vector<8x256xf32>
    %136 = arith.select %134, %129, %135 : vector<8x256xi1>, vector<8x256xf32>
    %c120 = arith.constant 120 : index
    %c0_87 = arith.constant 0 : index
    %137 = vector.load %arg14[%c120, %c0_87] : memref<216x256xf32, #tpu.memory_space<vmem>>, vector<8x256xf32>
    tpu.vector_store %arg14[%c120, %c0_87], %136 {strides = array<i32>} : memref<216x256xf32, #tpu.memory_space<vmem>>, vector<8x256xf32>,
    %c0_88 = arith.constant 0 : index
    %c160 = arith.constant 160 : index
    %138 = vector.load %arg13[%c0_88, %c160] : memref<8x512xf32, #tpu.memory_space<vmem>>, vector<8x256xf32>
    %c16_89 = arith.constant 16 : index
    %c0_90 = arith.constant 0 : index
    %139 = vector.load %arg11[%c16_89, %c0_90] : memref<27x256xf32, #tpu.memory_space<vmem>>, vector<1x256xf32>
    %cst_91 = arith.constant 0.000000e+00 : f32
    %140 = vector.broadcast %cst_91 : f32 to vector<1x256xf32>
    %141 = arith.cmpf one, %139, %140 : vector<1x256xf32>
    %cst_92 = arith.constant 0.000000e+00 : f32
    %142 = vector.shape_cast %141 : vector<1x256xi1> to vector<1x256xi1>
    %143 = vector.broadcast %142 : vector<1x256xi1> to vector<8x256xi1>
    %144 = vector.broadcast %cst_92 : f32 to vector<8x256xf32>
    %145 = arith.select %143, %138, %144 : vector<8x256xi1>, vector<8x256xf32>
    %c128_93 = arith.constant 128 : index
    %c0_94 = arith.constant 0 : index
    %146 = vector.load %arg14[%c128_93, %c0_94] : memref<216x256xf32, #tpu.memory_space<vmem>>, vector<8x256xf32>
    tpu.vector_store %arg14[%c128_93, %c0_94], %145 {strides = array<i32>} : memref<216x256xf32, #tpu.memory_space<vmem>>, vector<8x256xf32>,
    %c0_95 = arith.constant 0 : index
    %c162 = arith.constant 162 : index
    %147 = vector.load %arg13[%c0_95, %c162] : memref<8x512xf32, #tpu.memory_space<vmem>>, vector<8x256xf32>
    %c17 = arith.constant 17 : index
    %c0_96 = arith.constant 0 : index
    %148 = vector.load %arg11[%c17, %c0_96] : memref<27x256xf32, #tpu.memory_space<vmem>>, vector<1x256xf32>
    %cst_97 = arith.constant 0.000000e+00 : f32
    %149 = vector.broadcast %cst_97 : f32 to vector<1x256xf32>
    %150 = arith.cmpf one, %148, %149 : vector<1x256xf32>
    %cst_98 = arith.constant 0.000000e+00 : f32
    %151 = vector.shape_cast %150 : vector<1x256xi1> to vector<1x256xi1>
    %152 = vector.broadcast %151 : vector<1x256xi1> to vector<8x256xi1>
    %153 = vector.broadcast %cst_98 : f32 to vector<8x256xf32>
    %154 = arith.select %152, %147, %153 : vector<8x256xi1>, vector<8x256xf32>
    %c136 = arith.constant 136 : index
    %c0_99 = arith.constant 0 : index
    %155 = vector.load %arg14[%c136, %c0_99] : memref<216x256xf32, #tpu.memory_space<vmem>>, vector<8x256xf32>
    tpu.vector_store %arg14[%c136, %c0_99], %154 {strides = array<i32>} : memref<216x256xf32, #tpu.memory_space<vmem>>, vector<8x256xf32>,
    %c0_100 = arith.constant 0 : index
    %c77 = arith.constant 77 : index
    %156 = vector.load %arg13[%c0_100, %c77] : memref<8x512xf32, #tpu.memory_space<vmem>>, vector<8x256xf32>
    %c18 = arith.constant 18 : index
    %c0_101 = arith.constant 0 : index
    %157 = vector.load %arg11[%c18, %c0_101] : memref<27x256xf32, #tpu.memory_space<vmem>>, vector<1x256xf32>
    %cst_102 = arith.constant 0.000000e+00 : f32
    %158 = vector.broadcast %cst_102 : f32 to vector<1x256xf32>
    %159 = arith.cmpf one, %157, %158 : vector<1x256xf32>
    %cst_103 = arith.constant 0.000000e+00 : f32
    %160 = vector.shape_cast %159 : vector<1x256xi1> to vector<1x256xi1>
    %161 = vector.broadcast %160 : vector<1x256xi1> to vector<8x256xi1>
    %162 = vector.broadcast %cst_103 : f32 to vector<8x256xf32>
    %163 = arith.select %161, %156, %162 : vector<8x256xi1>, vector<8x256xf32>
    %c144_104 = arith.constant 144 : index
    %c0_105 = arith.constant 0 : index
    %164 = vector.load %arg14[%c144_104, %c0_105] : memref<216x256xf32, #tpu.memory_space<vmem>>, vector<8x256xf32>
    tpu.vector_store %arg14[%c144_104, %c0_105], %163 {strides = array<i32>} : memref<216x256xf32, #tpu.memory_space<vmem>>, vector<8x256xf32>,
    %c0_106 = arith.constant 0 : index
    %c80_107 = arith.constant 80 : index
    %165 = vector.load %arg13[%c0_106, %c80_107] : memref<8x512xf32, #tpu.memory_space<vmem>>, vector<8x256xf32>
    %c19 = arith.constant 19 : index
    %c0_108 = arith.constant 0 : index
    %166 = vector.load %arg11[%c19, %c0_108] : memref<27x256xf32, #tpu.memory_space<vmem>>, vector<1x256xf32>
    %cst_109 = arith.constant 0.000000e+00 : f32
    %167 = vector.broadcast %cst_109 : f32 to vector<1x256xf32>
    %168 = arith.cmpf one, %166, %167 : vector<1x256xf32>
    %cst_110 = arith.constant 0.000000e+00 : f32
    %169 = vector.shape_cast %168 : vector<1x256xi1> to vector<1x256xi1>
    %170 = vector.broadcast %169 : vector<1x256xi1> to vector<8x256xi1>
    %171 = vector.broadcast %cst_110 : f32 to vector<8x256xf32>
    %172 = arith.select %170, %165, %171 : vector<8x256xi1>, vector<8x256xf32>
    %c152 = arith.constant 152 : index
    %c0_111 = arith.constant 0 : index
    %173 = vector.load %arg14[%c152, %c0_111] : memref<216x256xf32, #tpu.memory_space<vmem>>, vector<8x256xf32>
    tpu.vector_store %arg14[%c152, %c0_111], %172 {strides = array<i32>} : memref<216x256xf32, #tpu.memory_space<vmem>>, vector<8x256xf32>,
    %c0_112 = arith.constant 0 : index
    %c83 = arith.constant 83 : index
    %174 = vector.load %arg13[%c0_112, %c83] : memref<8x512xf32, #tpu.memory_space<vmem>>, vector<8x256xf32>
    %c20 = arith.constant 20 : index
    %c0_113 = arith.constant 0 : index
    %175 = vector.load %arg11[%c20, %c0_113] : memref<27x256xf32, #tpu.memory_space<vmem>>, vector<1x256xf32>
    %cst_114 = arith.constant 0.000000e+00 : f32
    %176 = vector.broadcast %cst_114 : f32 to vector<1x256xf32>
    %177 = arith.cmpf one, %175, %176 : vector<1x256xf32>
    %cst_115 = arith.constant 0.000000e+00 : f32
    %178 = vector.shape_cast %177 : vector<1x256xi1> to vector<1x256xi1>
    %179 = vector.broadcast %178 : vector<1x256xi1> to vector<8x256xi1>
    %180 = vector.broadcast %cst_115 : f32 to vector<8x256xf32>
    %181 = arith.select %179, %174, %180 : vector<8x256xi1>, vector<8x256xf32>
    %c160_116 = arith.constant 160 : index
    %c0_117 = arith.constant 0 : index
    %182 = vector.load %arg14[%c160_116, %c0_117] : memref<216x256xf32, #tpu.memory_space<vmem>>, vector<8x256xf32>
    tpu.vector_store %arg14[%c160_116, %c0_117], %181 {strides = array<i32>} : memref<216x256xf32, #tpu.memory_space<vmem>>, vector<8x256xf32>,
    %c0_118 = arith.constant 0 : index
    %c125 = arith.constant 125 : index
    %183 = vector.load %arg13[%c0_118, %c125] : memref<8x512xf32, #tpu.memory_space<vmem>>, vector<8x256xf32>
    %c21 = arith.constant 21 : index
    %c0_119 = arith.constant 0 : index
    %184 = vector.load %arg11[%c21, %c0_119] : memref<27x256xf32, #tpu.memory_space<vmem>>, vector<1x256xf32>
    %cst_120 = arith.constant 0.000000e+00 : f32
    %185 = vector.broadcast %cst_120 : f32 to vector<1x256xf32>
    %186 = arith.cmpf one, %184, %185 : vector<1x256xf32>
    %cst_121 = arith.constant 0.000000e+00 : f32
    %187 = vector.shape_cast %186 : vector<1x256xi1> to vector<1x256xi1>
    %188 = vector.broadcast %187 : vector<1x256xi1> to vector<8x256xi1>
    %189 = vector.broadcast %cst_121 : f32 to vector<8x256xf32>
    %190 = arith.select %188, %183, %189 : vector<8x256xi1>, vector<8x256xf32>
    %c168 = arith.constant 168 : index
    %c0_122 = arith.constant 0 : index
    %191 = vector.load %arg14[%c168, %c0_122] : memref<216x256xf32, #tpu.memory_space<vmem>>, vector<8x256xf32>
    tpu.vector_store %arg14[%c168, %c0_122], %190 {strides = array<i32>} : memref<216x256xf32, #tpu.memory_space<vmem>>, vector<8x256xf32>,
    %c0_123 = arith.constant 0 : index
    %c128_124 = arith.constant 128 : index
    %192 = vector.load %arg13[%c0_123, %c128_124] : memref<8x512xf32, #tpu.memory_space<vmem>>, vector<8x256xf32>
    %c176 = arith.constant 176 : index
    %c0_125 = arith.constant 0 : index
    %193 = vector.load %arg14[%c176, %c0_125] : memref<216x256xf32, #tpu.memory_space<vmem>>, vector<8x256xf32>
    tpu.vector_store %arg14[%c176, %c0_125], %192 {strides = array<i32>} : memref<216x256xf32, #tpu.memory_space<vmem>>, vector<8x256xf32>,
    %c0_126 = arith.constant 0 : index
    %c131 = arith.constant 131 : index
    %194 = vector.load %arg13[%c0_126, %c131] : memref<8x512xf32, #tpu.memory_space<vmem>>, vector<8x256xf32>
    %c23 = arith.constant 23 : index
    %c0_127 = arith.constant 0 : index
    %195 = vector.load %arg11[%c23, %c0_127] : memref<27x256xf32, #tpu.memory_space<vmem>>, vector<1x256xf32>
    %cst_128 = arith.constant 0.000000e+00 : f32
    %196 = vector.broadcast %cst_128 : f32 to vector<1x256xf32>
    %197 = arith.cmpf one, %195, %196 : vector<1x256xf32>
    %cst_129 = arith.constant 0.000000e+00 : f32
    %198 = vector.shape_cast %197 : vector<1x256xi1> to vector<1x256xi1>
    %199 = vector.broadcast %198 : vector<1x256xi1> to vector<8x256xi1>
    %200 = vector.broadcast %cst_129 : f32 to vector<8x256xf32>
    %201 = arith.select %199, %194, %200 : vector<8x256xi1>, vector<8x256xf32>
    %c184 = arith.constant 184 : index
    %c0_130 = arith.constant 0 : index
    %202 = vector.load %arg14[%c184, %c0_130] : memref<216x256xf32, #tpu.memory_space<vmem>>, vector<8x256xf32>
    tpu.vector_store %arg14[%c184, %c0_130], %201 {strides = array<i32>} : memref<216x256xf32, #tpu.memory_space<vmem>>, vector<8x256xf32>,
    %c0_131 = arith.constant 0 : index
    %c173 = arith.constant 173 : index
    %203 = vector.load %arg13[%c0_131, %c173] : memref<8x512xf32, #tpu.memory_space<vmem>>, vector<8x256xf32>
    %c24_132 = arith.constant 24 : index
    %c0_133 = arith.constant 0 : index
    %204 = vector.load %arg11[%c24_132, %c0_133] : memref<27x256xf32, #tpu.memory_space<vmem>>, vector<1x256xf32>
    %cst_134 = arith.constant 0.000000e+00 : f32
    %205 = vector.broadcast %cst_134 : f32 to vector<1x256xf32>
    %206 = arith.cmpf one, %204, %205 : vector<1x256xf32>
    %cst_135 = arith.constant 0.000000e+00 : f32
    %207 = vector.shape_cast %206 : vector<1x256xi1> to vector<1x256xi1>
    %208 = vector.broadcast %207 : vector<1x256xi1> to vector<8x256xi1>
    %209 = vector.broadcast %cst_135 : f32 to vector<8x256xf32>
    %210 = arith.select %208, %203, %209 : vector<8x256xi1>, vector<8x256xf32>
    %c192 = arith.constant 192 : index
    %c0_136 = arith.constant 0 : index
    %211 = vector.load %arg14[%c192, %c0_136] : memref<216x256xf32, #tpu.memory_space<vmem>>, vector<8x256xf32>
    tpu.vector_store %arg14[%c192, %c0_136], %210 {strides = array<i32>} : memref<216x256xf32, #tpu.memory_space<vmem>>, vector<8x256xf32>,
    %c0_137 = arith.constant 0 : index
    %c176_138 = arith.constant 176 : index
    %212 = vector.load %arg13[%c0_137, %c176_138] : memref<8x512xf32, #tpu.memory_space<vmem>>, vector<8x256xf32>
    %c25 = arith.constant 25 : index
    %c0_139 = arith.constant 0 : index
    %213 = vector.load %arg11[%c25, %c0_139] : memref<27x256xf32, #tpu.memory_space<vmem>>, vector<1x256xf32>
    %cst_140 = arith.constant 0.000000e+00 : f32
    %214 = vector.broadcast %cst_140 : f32 to vector<1x256xf32>
    %215 = arith.cmpf one, %213, %214 : vector<1x256xf32>
    %cst_141 = arith.constant 0.000000e+00 : f32
    %216 = vector.shape_cast %215 : vector<1x256xi1> to vector<1x256xi1>
    %217 = vector.broadcast %216 : vector<1x256xi1> to vector<8x256xi1>
    %218 = vector.broadcast %cst_141 : f32 to vector<8x256xf32>
    %219 = arith.select %217, %212, %218 : vector<8x256xi1>, vector<8x256xf32>
    %c200 = arith.constant 200 : index
    %c0_142 = arith.constant 0 : index
    %220 = vector.load %arg14[%c200, %c0_142] : memref<216x256xf32, #tpu.memory_space<vmem>>, vector<8x256xf32>
    tpu.vector_store %arg14[%c200, %c0_142], %219 {strides = array<i32>} : memref<216x256xf32, #tpu.memory_space<vmem>>, vector<8x256xf32>,
    %c0_143 = arith.constant 0 : index
    %c179 = arith.constant 179 : index
    %221 = vector.load %arg13[%c0_143, %c179] : memref<8x512xf32, #tpu.memory_space<vmem>>, vector<8x256xf32>
    %c26 = arith.constant 26 : index
    %c0_144 = arith.constant 0 : index
    %222 = vector.load %arg11[%c26, %c0_144] : memref<27x256xf32, #tpu.memory_space<vmem>>, vector<1x256xf32>
    %cst_145 = arith.constant 0.000000e+00 : f32
    %223 = vector.broadcast %cst_145 : f32 to vector<1x256xf32>
    %224 = arith.cmpf one, %222, %223 : vector<1x256xf32>
    %cst_146 = arith.constant 0.000000e+00 : f32
    %225 = vector.shape_cast %224 : vector<1x256xi1> to vector<1x256xi1>
    %226 = vector.broadcast %225 : vector<1x256xi1> to vector<8x256xi1>
    %227 = vector.broadcast %cst_146 : f32 to vector<8x256xf32>
    %228 = arith.select %226, %221, %227 : vector<8x256xi1>, vector<8x256xf32>
    %c208 = arith.constant 208 : index
    %c0_147 = arith.constant 0 : index
    %229 = vector.load %arg14[%c208, %c0_147] : memref<216x256xf32, #tpu.memory_space<vmem>>, vector<8x256xf32>
    tpu.vector_store %arg14[%c208, %c0_147], %228 {strides = array<i32>} : memref<216x256xf32, #tpu.memory_space<vmem>>, vector<8x256xf32>,
    %c0_148 = arith.constant 0 : index
    %c0_149 = arith.constant 0 : index
    %230 = vector.load %arg4[%c0_148, %c0_149] : memref<24x216xf32, #tpu.memory_space<vmem>>, vector<24x216xf32>
    %c0_150 = arith.constant 0 : index
    %c0_151 = arith.constant 0 : index
    %231 = vector.load %arg14[%c0_150, %c0_151] : memref<216x256xf32, #tpu.memory_space<vmem>>, vector<216x256xf32>
    %cst_152 = arith.constant dense<0.000000e+00> : vector<24x256xf32>
    %232 = tpu.matmul %230, %231, %cst_152 {dimension_numbers = #tpu.dot_dimension_numbers<[1], [0], [0], [1], [0, 0, 1, 1], [], []>} : vector<24x216xf32>, vector<216x256xf32>, vector<24x256xf32> -> vector<24x256xf32>
    %c0_153 = arith.constant 0 : index
    %c0_154 = arith.constant 0 : index
    %233 = vector.load %arg5[%c0_153, %c0_154] : memref<24x1xf32, #tpu.memory_space<vmem>>, vector<24x1xf32>
    %234 = vector.broadcast %233 : vector<24x1xf32> to vector<24x256xf32>
    %235 = arith.addf %232, %234 : vector<24x256xf32>
    %c0_155 = arith.constant 0 : index
    %c0_156 = arith.constant 0 : index
    %236 = vector.load %arg9[%c0_155, %c0_156] : memref<256x4xf32, #tpu.memory_space<vmem>>, vector<256x4xf32>
    %cst_157 = arith.constant dense<0.000000e+00> : vector<24x4xf32>
    %237 = tpu.matmul %235, %236, %cst_157 {dimension_numbers = #tpu.dot_dimension_numbers<[1], [0], [0], [1], [0, 0, 1, 1], [], []>} : vector<24x256xf32>, vector<256x4xf32>, vector<24x4xf32> -> vector<24x4xf32>
    %cst_158 = arith.constant 1.562500e-02 : f32
    %238 = vector.broadcast %cst_158 : f32 to vector<24x4xf32>
    %239 = arith.mulf %237, %238 : vector<24x4xf32>
    %cst_159 = arith.constant 0.000000e+00 : f32
    %240 = vector.broadcast %cst_159 : f32 to vector<42x4xf32>
    %c0_160 = arith.constant 0 : index
    %c0_161 = arith.constant 0 : index
    %241 = vector.load %arg15[%c0_160, %c0_161] : memref<42x4xf32, #tpu.memory_space<vmem>>, vector<42x4xf32>
    tpu.vector_store %arg15[%c0_160, %c0_161], %240 {strides = array<i32>} : memref<42x4xf32, #tpu.memory_space<vmem>>, vector<42x4xf32>,
    %242 = vector.extract_strided_slice %239 {offsets = [0, 0], sizes = [8, 4], strides = [1, 1]} : vector<24x4xf32> to vector<8x4xf32>
    %c3_162 = arith.constant 3 : index
    %c0_163 = arith.constant 0 : index
    %243 = vector.load %arg15[%c3_162, %c0_163] : memref<42x4xf32, #tpu.memory_space<vmem>>, vector<8x4xf32>
    tpu.vector_store %arg15[%c3_162, %c0_163], %242 {strides = array<i32>} : memref<42x4xf32, #tpu.memory_space<vmem>>, vector<8x4xf32>,
    %244 = vector.extract_strided_slice %239 {offsets = [8, 0], sizes = [8, 4], strides = [1, 1]} : vector<24x4xf32> to vector<8x4xf32>
    %c17_164 = arith.constant 17 : index
    %c0_165 = arith.constant 0 : index
    %245 = vector.load %arg15[%c17_164, %c0_165] : memref<42x4xf32, #tpu.memory_space<vmem>>, vector<8x4xf32>
    tpu.vector_store %arg15[%c17_164, %c0_165], %244 {strides = array<i32>} : memref<42x4xf32, #tpu.memory_space<vmem>>, vector<8x4xf32>,
    %246 = vector.extract_strided_slice %239 {offsets = [16, 0], sizes = [8, 4], strides = [1, 1]} : vector<24x4xf32> to vector<8x4xf32>
    %c31 = arith.constant 31 : index
    %c0_166 = arith.constant 0 : index
    %247 = vector.load %arg15[%c31, %c0_166] : memref<42x4xf32, #tpu.memory_space<vmem>>, vector<8x4xf32>
    tpu.vector_store %arg15[%c31, %c0_166], %246 {strides = array<i32>} : memref<42x4xf32, #tpu.memory_space<vmem>>, vector<8x4xf32>,
    %cst_167 = arith.constant 0.000000e+00 : f32
    %248 = vector.broadcast %cst_167 : f32 to vector<36x4xf32>
    %c0_168 = arith.constant 0 : index
    %c0_169 = arith.constant 0 : index
    %c0_170 = arith.constant 0 : index
    %249 = vector.load %arg6[%c0_168, %c0_169, %c0_170] : memref<7x36x4xf32, #tpu.memory_space<vmem>>, vector<1x36x4xf32>
    %250 = vector.shape_cast %249 : vector<1x36x4xf32> to vector<36x4xf32>
    %c0_171 = arith.constant 0 : index
    %c0_172 = arith.constant 0 : index
    %251 = vector.load %arg15[%c0_171, %c0_172] : memref<42x4xf32, #tpu.memory_space<vmem>>, vector<36x4xf32>
    %252 = arith.mulf %250, %251 : vector<36x4xf32>
    %253 = arith.addf %248, %252 : vector<36x4xf32>
    %c1_173 = arith.constant 1 : index
    %c0_174 = arith.constant 0 : index
    %c0_175 = arith.constant 0 : index
    %254 = vector.load %arg6[%c1_173, %c0_174, %c0_175] : memref<7x36x4xf32, #tpu.memory_space<vmem>>, vector<1x36x4xf32>
    %255 = vector.shape_cast %254 : vector<1x36x4xf32> to vector<36x4xf32>
    %c1_176 = arith.constant 1 : index
    %c0_177 = arith.constant 0 : index
    %256 = vector.load %arg15[%c1_176, %c0_177] : memref<42x4xf32, #tpu.memory_space<vmem>>, vector<36x4xf32>
    %257 = arith.mulf %255, %256 : vector<36x4xf32>
    %258 = arith.addf %253, %257 : vector<36x4xf32>
    %c2_178 = arith.constant 2 : index
    %c0_179 = arith.constant 0 : index
    %c0_180 = arith.constant 0 : index
    %259 = vector.load %arg6[%c2_178, %c0_179, %c0_180] : memref<7x36x4xf32, #tpu.memory_space<vmem>>, vector<1x36x4xf32>
    %260 = vector.shape_cast %259 : vector<1x36x4xf32> to vector<36x4xf32>
    %c2_181 = arith.constant 2 : index
    %c0_182 = arith.constant 0 : index
    %261 = vector.load %arg15[%c2_181, %c0_182] : memref<42x4xf32, #tpu.memory_space<vmem>>, vector<36x4xf32>
    %262 = arith.mulf %260, %261 : vector<36x4xf32>
    %263 = arith.addf %258, %262 : vector<36x4xf32>
    %c3_183 = arith.constant 3 : index
    %c0_184 = arith.constant 0 : index
    %c0_185 = arith.constant 0 : index
    %264 = vector.load %arg6[%c3_183, %c0_184, %c0_185] : memref<7x36x4xf32, #tpu.memory_space<vmem>>, vector<1x36x4xf32>
    %265 = vector.shape_cast %264 : vector<1x36x4xf32> to vector<36x4xf32>
    %c3_186 = arith.constant 3 : index
    %c0_187 = arith.constant 0 : index
    %266 = vector.load %arg15[%c3_186, %c0_187] : memref<42x4xf32, #tpu.memory_space<vmem>>, vector<36x4xf32>
    %267 = arith.mulf %265, %266 : vector<36x4xf32>
    %268 = arith.addf %263, %267 : vector<36x4xf32>
    %c4 = arith.constant 4 : index
    %c0_188 = arith.constant 0 : index
    %c0_189 = arith.constant 0 : index
    %269 = vector.load %arg6[%c4, %c0_188, %c0_189] : memref<7x36x4xf32, #tpu.memory_space<vmem>>, vector<1x36x4xf32>
    %270 = vector.shape_cast %269 : vector<1x36x4xf32> to vector<36x4xf32>
    %c4_190 = arith.constant 4 : index
    %c0_191 = arith.constant 0 : index
    %271 = vector.load %arg15[%c4_190, %c0_191] : memref<42x4xf32, #tpu.memory_space<vmem>>, vector<36x4xf32>
    %272 = arith.mulf %270, %271 : vector<36x4xf32>
    %273 = arith.addf %268, %272 : vector<36x4xf32>
    %c5_192 = arith.constant 5 : index
    %c0_193 = arith.constant 0 : index
    %c0_194 = arith.constant 0 : index
    %274 = vector.load %arg6[%c5_192, %c0_193, %c0_194] : memref<7x36x4xf32, #tpu.memory_space<vmem>>, vector<1x36x4xf32>
    %275 = vector.shape_cast %274 : vector<1x36x4xf32> to vector<36x4xf32>
    %c5_195 = arith.constant 5 : index
    %c0_196 = arith.constant 0 : index
    %276 = vector.load %arg15[%c5_195, %c0_196] : memref<42x4xf32, #tpu.memory_space<vmem>>, vector<36x4xf32>
    %277 = arith.mulf %275, %276 : vector<36x4xf32>
    %278 = arith.addf %273, %277 : vector<36x4xf32>
    %c6_197 = arith.constant 6 : index
    %c0_198 = arith.constant 0 : index
    %c0_199 = arith.constant 0 : index
    %279 = vector.load %arg6[%c6_197, %c0_198, %c0_199] : memref<7x36x4xf32, #tpu.memory_space<vmem>>, vector<1x36x4xf32>
    %280 = vector.shape_cast %279 : vector<1x36x4xf32> to vector<36x4xf32>
    %c6_200 = arith.constant 6 : index
    %c0_201 = arith.constant 0 : index
    %281 = vector.load %arg15[%c6_200, %c0_201] : memref<42x4xf32, #tpu.memory_space<vmem>>, vector<36x4xf32>
    %282 = arith.mulf %280, %281 : vector<36x4xf32>
    %283 = arith.addf %278, %282 : vector<36x4xf32>
    %cst_202 = arith.constant 0.000000e+00 : f32
    %284 = vector.broadcast %cst_202 : f32 to vector<36x4xf32>
    %285 = arith.subf %284, %283 : vector<36x4xf32>
    %286 = math.exp %285 : vector<36x4xf32>
    %cst_203 = arith.constant 1.000000e+00 : f32
    %287 = vector.broadcast %cst_203 : f32 to vector<36x4xf32>
    %288 = arith.addf %287, %286 : vector<36x4xf32>
    %cst_204 = arith.constant 1.000000e+00 : f32
    %289 = vector.broadcast %cst_204 : f32 to vector<36x4xf32>
    %290 = arith.divf %289, %288 : vector<36x4xf32>
    %291 = vector.extract_strided_slice %290 {offsets = [0, 0], sizes = [8, 4], strides = [1, 1]} : vector<36x4xf32> to vector<8x4xf32>
    %292 = vector.extract_strided_slice %290 {offsets = [14, 0], sizes = [8, 4], strides = [1, 1]} : vector<36x4xf32> to vector<8x4xf32>
    %293 = vector.extract_strided_slice %290 {offsets = [28, 0], sizes = [8, 4], strides = [1, 1]} : vector<36x4xf32> to vector<8x4xf32>
    %294 = tpu.concatenate %291, %292, %293 in 0 : vector<8x4xf32>, vector<8x4xf32>, vector<8x4xf32> -> vector<24x4xf32>
    %c0_205 = arith.constant 0 : index
    %c0_206 = arith.constant 0 : index
    %295 = vector.load %arg10[%c0_205, %c0_206] : memref<4x256xf32, #tpu.memory_space<vmem>>, vector<4x256xf32>
    %cst_207 = arith.constant dense<0.000000e+00> : vector<24x256xf32>
    %296 = tpu.matmul %294, %295, %cst_207 {dimension_numbers = #tpu.dot_dimension_numbers<[1], [0], [0], [1], [0, 0, 1, 1], [], []>} : vector<24x4xf32>, vector<4x256xf32>, vector<24x256xf32> -> vector<24x256xf32>
    %297 = arith.mulf %235, %296 : vector<24x256xf32>
    %c0_208 = arith.constant 0 : index
    %c0_209 = arith.constant 0 : index
    %298 = vector.load %arg7[%c0_208, %c0_209] : memref<32x24xf32, #tpu.memory_space<vmem>>, vector<32x24xf32>
    %cst_210 = arith.constant dense<0.000000e+00> : vector<32x256xf32>
    %299 = tpu.matmul %298, %297, %cst_210 {dimension_numbers = #tpu.dot_dimension_numbers<[1], [0], [0], [1], [0, 0, 1, 1], [], []>} : vector<32x24xf32>, vector<24x256xf32>, vector<32x256xf32> -> vector<32x256xf32>
    %c0_211 = arith.constant 0 : index
    %c0_212 = arith.constant 0 : index
    %300 = vector.load %arg8[%c0_211, %c0_212] : memref<32x1xf32, #tpu.memory_space<vmem>>, vector<32x1xf32>
    %301 = vector.broadcast %300 : vector<32x1xf32> to vector<32x256xf32>
    %302 = arith.addf %299, %301 : vector<32x256xf32>
    %c0_213 = arith.constant 0 : index
    %c0_214 = arith.constant 0 : index
    %c0_215 = arith.constant 0 : index
    %303 = vector.load %arg12[%c0_213, %c0_214, %c0_215] : memref<1x32x256xf32, #tpu.memory_space<vmem>>, vector<1x32x256xf32>
    %304 = vector.shape_cast %303 : vector<1x32x256xf32> to vector<32x256xf32>
    %305 = vector.shape_cast %302 : vector<32x256xf32> to vector<1x32x256xf32>
    tpu.vector_store %arg12[%c0_213, %c0_214, %c0_215], %305 {strides = array<i32>} : memref<1x32x256xf32, #tpu.memory_space<vmem>>, vector<1x32x256xf32>,
    return
  }
  func.func @transform_0(%arg0: i32) -> (i32, i32, i32) {
    %c0_i32 = arith.constant 0 : i32
    %c0_i32_0 = arith.constant 0 : i32
    %c0_i32_1 = arith.constant 0 : i32
    return %arg0, %c0_i32, %c0_i32_0 : i32, i32, i32
  }
  func.func @transform_1(%arg0: i32) -> (i32, i32) {
    %c0_i32 = arith.constant 0 : i32
    %c0_i32_0 = arith.constant 0 : i32
    %c0_i32_1 = arith.constant 0 : i32
    return %c0_i32, %c0_i32_0 : i32, i32
  }
  func.func @transform_2(%arg0: i32) -> (i32, i32) {
    %c0_i32 = arith.constant 0 : i32
    %c0_i32_0 = arith.constant 0 : i32
    %c0_i32_1 = arith.constant 0 : i32
    return %c0_i32, %c0_i32_0 : i32, i32
  }
  func.func @transform_3(%arg0: i32) -> (i32, i32) {
    %c0_i32 = arith.constant 0 : i32
    %c0_i32_0 = arith.constant 0 : i32
    %c0_i32_1 = arith.constant 0 : i32
    return %c0_i32, %c0_i32_0 : i32, i32
  }
  func.func @transform_4(%arg0: i32) -> (i32, i32) {
    %c0_i32 = arith.constant 0 : i32
    %c0_i32_0 = arith.constant 0 : i32
    %c0_i32_1 = arith.constant 0 : i32
    return %c0_i32, %c0_i32_0 : i32, i32
  }
  func.func @transform_5(%arg0: i32) -> (i32, i32, i32) {
    %c0_i32 = arith.constant 0 : i32
    %c0_i32_0 = arith.constant 0 : i32
    %c0_i32_1 = arith.constant 0 : i32
    %c0_i32_2 = arith.constant 0 : i32
    return %c0_i32, %c0_i32_0, %c0_i32_1 : i32, i32, i32
  }
  func.func @transform_6(%arg0: i32) -> (i32, i32) {
    %c0_i32 = arith.constant 0 : i32
    %c0_i32_0 = arith.constant 0 : i32
    %c0_i32_1 = arith.constant 0 : i32
    return %c0_i32, %c0_i32_0 : i32, i32
  }
  func.func @transform_7(%arg0: i32) -> (i32, i32) {
    %c0_i32 = arith.constant 0 : i32
    %c0_i32_0 = arith.constant 0 : i32
    %c0_i32_1 = arith.constant 0 : i32
    return %c0_i32, %c0_i32_0 : i32, i32
  }
  func.func @transform_8(%arg0: i32) -> (i32, i32) {
    %c0_i32 = arith.constant 0 : i32
    %c0_i32_0 = arith.constant 0 : i32
    %c0_i32_1 = arith.constant 0 : i32
    return %c0_i32, %c0_i32_0 : i32, i32
  }
  func.func @transform_9(%arg0: i32) -> (i32, i32) {
    %c0_i32 = arith.constant 0 : i32
    %c0_i32_0 = arith.constant 0 : i32
    %c0_i32_1 = arith.constant 0 : i32
    return %c0_i32, %c0_i32_0 : i32, i32
  }
  func.func @transform_10(%arg0: i32) -> (i32, i32) {
    %c0_i32 = arith.constant 0 : i32
    %c0_i32_0 = arith.constant 0 : i32
    %c0_i32_1 = arith.constant 0 : i32
    return %c0_i32, %c0_i32_0 : i32, i32
  }
  func.func @transform_11(%arg0: i32) -> (i32, i32, i32) {
    %c0_i32 = arith.constant 0 : i32
    %c0_i32_0 = arith.constant 0 : i32
    %c0_i32_1 = arith.constant 0 : i32
    return %arg0, %c0_i32, %c0_i32_0 : i32, i32, i32
  }
}

</mosaic_0001>

<bundles_post_ra>
// kernel: mssra_forward.1
= control target key start
LH: loop header
LB: loop body
LE: loop exit
PB: predicated region body
PF: predicated region fallthrough
CT: control target
= control target key end

     0   :  { %s2429_s17 = smov 0   ;;  %s3422_s0 = inlined_call_operand.vmem [shape: f32[2,32,256], index: 0, kind: input, shape index: {}]   ;;  %s3423_s1 = inlined_call_operand.vmem [shape: f32[8,32], index: 1, kind: input, shape index: {}]   ;;  %s3424_s2 = inlined_call_operand.vmem [shape: f32[8,1], index: 2, kind: input, shape index: {}]   ;;  %s3425_s3 = inlined_call_operand.vmem [shape: f32[24,216], index: 3, kind: input, shape index: {}]   ;;  %s3426_s4 = inlined_call_operand.vmem [shape: f32[24,1], index: 4, kind: input, shape index: {}]   ;;  %s3427_s5 = inlined_call_operand.vmem [shape: f32[7,36,4], index: 5, kind: input, shape index: {}]   ;;  %s3428_s6 = inlined_call_operand.vmem [shape: f32[32,24], index: 6, kind: input, shape index: {}]   ;;  %s3429_s7 = inlined_call_operand.vmem [shape: f32[32,1], index: 7, kind: input, shape index: {}]   ;;  %s3430_s8 = inlined_call_operand.vmem [shape: f32[256,4], index: 8, kind: input, shape index: {}]   ;;  %s3431_s9 = inlined_call_operand.vmem [shape: f32[4,256], index: 9, kind: input, shape index: {}]   ;;  %s3432_s10 = inlined_call_operand.vmem [shape: f32[27,256], index: 10, kind: input, shape index: {}]   ;;  %s3433_s11 = inlined_call_operand.vmem [shape: f32[2,32,256], index: 11, kind: output, shape index: {}]  }
   0x1 LB: > { %s2110_s18 = sadd.s32 4294967295, %s2341_s17   ;;  %p2114_p0 = scmp.ge.s32.totalorder %s2341_s17, 1  ;;  %s2341_s17 = sphi %s2429_s17, %s21_s17  }
   0x2   : > { %p337_p1 = scmp.lt.s32.totalorder %s2341_s17, 3 }
   0x4   : > { %p338_p2 = pnand %p2114_p0, %p337_p1 }
   0x6   : > { %341 = sbr.rel (%p338_p2) target bundleno = 1319 (0x527), region = 64 }
   0xb   : > { %p377_p3 = scmp.lt.s32.totalorder %s2110_s18, 1  ;;  %v396_v0 = vld [vmem:[%s3424_s2] sm:$0xff]  ;;  %v3454_v1 = vmov 0.0   ;;  %v2344_v2 = vmov 0   ;;  %v2442_v3 = vld [vmem:[#allocation2 + $0x10] sm:$0xff]  ;;  %s2345_s21 = smov 98  }
   0xc   : > { %470 = vmatprep.mubr.f32.mxu1 %v3454_v1  ;;  %2312 = vset.pattern.permute.xlu0 %v2344_v2  ;;  %v866_v4 = vld [vmem:[#allocation2 + $0x18] sm:$0xff]  ;;  %s3446_s26 = smov 126   ;;  %s2347_s27 = smov 30   ;;  %v395_v13 = vld [vmem:[%s3423_s1] sm:$0xff]  ;;  %vm402_vm0 = vcmask 261120   ;;  %v1330_v33 = vld [vmem:[%s3425_s3 + $0x8] sm:$0xff] }
   0xd   : > { %s3527_s18 = smov (!%p377_p3, %s2110_s18), 1  ;;  %399 = vperm.xlu0 %2312, %v396_v0   ;;  %964 = vrot.lane.b32.xlu1 %v2442_v3, %s2345_s21  ;;  %s3445_s28 = smov 2   ;;  %vm1407_vm1 = vcmask 719872   ;;  %v1390_v38 = vld [vmem:[%s3426_s4 + $0x8] sm:$0xff]  ;;  %v1921_v41 = vld [vmem:[%s3429_s7] sm:$0xff]  ;;  %v1531_v45 = vld [vmem:[%s3430_s8 + $0xf8] sm:$0xff] }
   0xe   : > { %2313 = vset.pattern.permute.xlu1 %v2344_v2  ;;  %s3434_s22 = sshll.u32 %s3527_s18, 6  ;;  %s3448_s29 = smov 34   ;;  %v1389_v42 = vld [vmem:[%s3426_s4] sm:$0xff]  ;;  %v1515_v46 = vld [vmem:[%s3430_s8 + $0x78] sm:$0xff]  ;;  %v1923_v47 = vld [vmem:[%s3429_s7 + $0x10] sm:$0xff]  ;;  %2237 = vmatprep.subr.mxu0 %v1531_v45  ;;  %vm966_vm5 = vcmask 801792  }
   0xf   : > { %s381_s25 = scalar_lea.vmem %s3422_s0, %s3434_s22  ;;  %s3447_s13 = smov 32   ;;  %v1391_v48 = vld [vmem:[%s3426_s4 + $0x10] sm:$0xff]  ;;  %2238 = vmatpush3.msra.mxu0 %v1515_v46  ;;  %v1529_v51 = vld [vmem:[%s3430_s8 + $0xe8] sm:$0xff]  ;;  %v1528_v54 = vld [vmem:[%s3430_s8 + $0xe0] sm:$0xff]  ;;  %vm931_vm10 = vcmask 1031168   ;;  %vm892_vm15 = vcmask 15360  }
  0x10   : > { %v394_v5 = vld [vmem:[%s381_s25 + $0x38] sm:$0xff]  ;;  %v393_v6 = vld [vmem:[%s381_s25 + $0x30] sm:$0xff]  ;;  %v392_v7 = vld [vmem:[%s381_s25 + $0x28] sm:$0xff]  ;;  %s3449_s14 = smov 111   ;;  %s2352_s15 = smov 112  }
  0x11   : > { %929 = vrot.lane.b32.xlu1 %v2442_v3, %s3446_s26  ;;  %430 = vmatprep.subr.mxu1 %v394_v5  ;;  %v391_v8 = vld [vmem:[%s381_s25 + $0x20] sm:$0xff]  ;;  %v390_v9 = vld [vmem:[%s381_s25 + $0x18] sm:$0xff]  ;;  %v389_v10 = vld [vmem:[%s381_s25 + $0x10] sm:$0xff]  ;;  %s2353_s16 = smov 113   ;;  %s2354_s19 = smov 127  }
  0x12   : > { %851 = vrot.lane.b32.xlu0 %v866_v4, %s2347_s27  ;;  %431 = vmatpush1.msra.mxu1 %v393_v6  ;;  %v388_v11 = vld [vmem:[%s381_s25 + $0x8] sm:$0xff]  ;;  %v387_v12 = vld [vmem:[%s381_s25] sm:$0xff]  ;;  %s3435_s20 = smov 15   ;;  %s3441_s23 = smov 1   ;;  %v1530_v49 = vld [vmem:[%s3430_s8 + $0xf0] sm:$0xff] }
  0x13   : > { %432 = vmatprep.subr.mxu1 %v392_v7  ;;  %s3437_s24 = smov 17   ;;  %s3439_s25 = smov 16   ;;  %v1514_v50 = vld [vmem:[%s3430_s8 + $0x70] sm:$0xff]  ;;  %2239 = vmatprep.subr.mxu0 %v1530_v49  ;;  %v1513_v52 = vld [vmem:[%s3430_s8 + $0x68] sm:$0xff]  ;;  %v1512_v57 = vld [vmem:[%s3430_s8 + $0x60] sm:$0xff] }
  0x14   : > { %433 = vmatpush1.msra.mxu1 %v391_v8  ;;  %s3443_s30 = smov 77   ;;  %s2360_s12 = smov 80   ;;  %v1922_v53 = vld [vmem:[%s3429_s7 + $0x8] sm:$0xff]  ;;  %2240 = vmatpush3.msra.mxu0 %v1514_v50  ;;  %v1527_v58 = vld [vmem:[%s3430_s8 + $0xd8] sm:$0xff]  ;;  %v1526_v61 = vld [vmem:[%s3430_s8 + $0xd0] sm:$0xff] }
  0x15   : > { %886 = vrot.lane.b32.xlu1 %v866_v4, %s3445_s28  ;;  %434 = vmatprep.subr.mxu1 %v390_v9  ;;  %s2361_s22 = smov 83   ;;  %v1511_v59 = vld [vmem:[%s3430_s8 + $0x58] sm:$0xff]  ;;  %v1510_v0 = vld [vmem:[%s3430_s8 + $0x50] sm:$0xff]  ;;  %v1524_v5 = vld [vmem:[%s3430_s8 + $0xc0] sm:$0xff] }
  0x16   : > { %782 = vrot.lane.b32.xlu0 %v866_v4, %s3448_s29  ;;  %435 = vmatpush1.msra.mxu1 %v389_v10  ;;  %v1924_v60 = vld [vmem:[%s3429_s7 + $0x18] sm:$0xff]  ;;  %v1508_v8 = vld [vmem:[%s3430_s8 + $0x40] sm:$0xff] }
  0x17   : > { %436 = vmatprep.subr.mxu1 %v388_v11  ;;  %2241 = vmatprep.subr.mxu0 %v1529_v51  ;;  %v1523_v9 = vld [vmem:[%s3430_s8 + $0xb8] sm:$0xff]  ;;  %v1522_v11 = vld [vmem:[%s3430_s8 + $0xb0] sm:$0xff]  ;;  %v485_v51 = vlaneseq }
  0x18   : > { %437 = vmatpush1.msra.mxu1 %v387_v12  ;;  %2242 = vmatpush3.msra.mxu0 %v1513_v52  ;;  %v1507_v10 = vld [vmem:[%s3430_s8 + $0x38] sm:$0xff] }
  0x19   : > { %817 = vrot.lane.b32.xlu1 %v866_v4, %s3447_s13  ;;  %2119 = vmatmul.mubr.msk.f32.vlgmr.msra.gmra.mxu1 %vm402_vm0, %v395_v13  ;;  %v1519_v45 = vld [vmem:[%s3430_s8 + $0x98] sm:$0xff] }
  0x1a   : > { %751 = vrot.lane.b32.xlu0 %v2442_v3, %s3449_s14  ;;  %2143 = vmatprep.mubr.msk.f32.mxu1 %vm1407_vm1, %v1330_v33  ;;  %v1520_v33 = vld [vmem:[%s3430_s8 + $0xa0] sm:$0xff]  ;;  %v1503_v46 = vld [vmem:[%s3430_s8 + $0x18] sm:$0xff] }
  0x1b   : > { %2243 = vmatprep.subr.mxu0 %v1528_v54  ;;  %v2132_v54 = vld [vmem:[%s3432_s10 + $0x17] ss:$8 sm:$0x3] }
  0x1c   : > { %2244 = vmatpush3.msra.mxu0 %v1512_v57  ;;  %v486_v57 = vshrl.u32 %v485_v51, 7  ;;  %vm945_vm2 = vcmp.ne.f32.partialorder %v2132_v54, 0.0 }
  0x1d   : > { %716 = vrot.lane.b32.xlu1 %v2442_v3, %s2352_s15  ;;  %2245 = vmatprep.subr.mxu0 %v1527_v58 }
  0x1e   : > { %681 = vrot.lane.b32.xlu0 %v2442_v3, %s2353_s16  ;;  %2246 = vmatpush3.msra.mxu0 %v1511_v59 }
  0x1f   : > { %2247 = vmatprep.subr.mxu0 %v1526_v61  ;;  %v2776_v61 = vsub.s32 1, %v486_v57 }
  0x20   : > { %2248 = vmatpush3.msra.mxu0 %v1510_v0 }
  0x21   : > { %646 = vrot.lane.b32.xlu1 %v2442_v3, %s2354_s19 }
  0x22   : > { %568 = vrot.lane.b32.xlu0 %v866_v4, %s3435_s20  ;;  %s3450_s20 = smov 125  }
  0x25   : > { %603 = vrot.lane.b32.xlu1 %v866_v4, %s3441_s23  ;;  %s3452_s23 = smov 48  }
  0x26   : > { %498 = vrot.lane.b32.xlu0 %v866_v4, %s3437_s24  ;;  %s3451_s24 = smov 3  }
  0x29   : > { %533 = vrot.lane.b32.xlu1 %v866_v4, %s3439_s25  ;;  %s2364_s25 = smov 45  }
  0x2a   : > { %1318 = vrot.lane.b32.xlu0 %v2442_v3, %s3443_s30  ;;  %s3453_s30 = smov 51  }
  0x2d   : > { %1283 = vrot.lane.b32.xlu1 %v2442_v3, %s2360_s12 }
  0x2e   : > { %1248 = vrot.lane.b32.xlu0 %v2442_v3, %s2361_s22 }
  0x31   : > { %1213 = vrot.lane.b32.xlu1 %v2442_v3, %s3450_s20 }
  0x32   : > { %1135 = vrot.lane.b32.xlu0 %v866_v4, %s2364_s25 }
  0x35   : > { %1170 = vrot.lane.b32.xlu1 %v866_v4, %s3451_s24 }
  0x36   : > { %1065 = vrot.lane.b32.xlu0 %v866_v4, %s3453_s30 }
  0x39   : > { %1100 = vrot.lane.b32.xlu1 %v866_v4, %s3452_s23  ;;  %v1509_v4 = vld [vmem:[%s3430_s8 + $0x48] sm:$0xff] }
  0x7f   : > { %v2537_v19 = vpop.permute.xlu1 %964 }
  0x83   : > { %v2547_v20 = vpop.permute.xlu1 %929 }
  0x87   : > { %v2553_v21 = vpop.permute.xlu1 %886 }
  0x88   : > { %v400_v14 = vpop.permute.xlu0 %399 }
  0x8b   : > { %v2565_v23 = vpop.permute.xlu1 %817 }
  0x8c   : > { %v2555_v22 = vpop.permute.xlu0 %851 }
  0x8f   : > { %v2572_v25 = vpop.permute.xlu1 %716 }
  0x90   : > { %v2567_v24 = vpop.permute.xlu0 %782 }
  0x93   : > { %v2584_v27 = vpop.permute.xlu1 %646 }
  0x94   : > { %v2574_v26 = vpop.permute.xlu0 %751 }
  0x97   : > { %v2591_v29 = vpop.permute.xlu1 %603 }
  0x98   : > { %v2586_v28 = vpop.permute.xlu0 %681 }
  0x9b   : > { %v2603_v31 = vpop.permute.xlu1 %533 }
  0x9c   : > { %v2593_v30 = vpop.permute.xlu0 %568 }
  0x9f   : > { %v2614_v34 = vpop.permute.xlu1 %1283 }
  0xa0   : > { %v2605_v32 = vpop.permute.xlu0 %498 }
  0xa3   : > { %v2622_v36 = vpop.permute.xlu1 %1213 }
  0xa4   : > { %v2616_v35 = vpop.permute.xlu0 %1318 }
  0xa7   : > { %v2630_v39 = vpop.permute.xlu1 %1170 }
  0xa8   : > { %v2624_v37 = vpop.permute.xlu0 %1248 }
  0xab   : > { %v2640_v43 = vpop.permute.xlu1 %1100 }
  0xac   : > { %v2632_v40 = vpop.permute.xlu0 %1135 }
  0xb0   : > { %v2642_v44 = vpop.permute.xlu0 %1065 }
  0xb1   : > { %3470 = vst [vmem:[#allocation5_spill] sm:$0xff] %v2642_v44 }
  0xd9   : > { %v472_v15 = vpop.f32.mrf.mxu1 }
  0xda   : > { %v2489_v16 = vadd.f32 %v472_v15, %v400_v14  ;;  %v1521_v15 = vld [vmem:[%s3430_s8 + $0xa8] sm:$0xff] }
  0xdb   : > { %v474_v17 = vpop.f32.mrf.mxu1 }
  0xdc   : > { %v2491_v18 = vadd.f32 %v474_v17, %v400_v14  ;;  %960 = vrot.lane.b32.xlu1 %v2489_v16, %s2345_s21  ;;  %925 = vrot.lane.b32.xlu0 %v2489_v16, %s3446_s26  ;;  %s3457_s26 = smov 15   ;;  %v1506_v14 = vld [vmem:[%s3430_s8 + $0x30] sm:$0xff]  ;;  %v1505_v17 = vld [vmem:[%s3430_s8 + $0x28] sm:$0xff] }
  0xe0   : > { %888 = vrot.lane.b32.xlu1 %v2489_v16, %s3445_s28  ;;  %853 = vrot.lane.b32.xlu0 %v2489_v16, %s2347_s27  ;;  %s3456_s28 = smov 1  }
  0xe4   : > { %819 = vrot.lane.b32.xlu1 %v2489_v16, %s3447_s13  ;;  %784 = vrot.lane.b32.xlu0 %v2489_v16, %s3448_s29  ;;  %s3458_s13 = smov 16   ;;  %s3459_s29 = smov 17  }
  0xe8   : > { %747 = vrot.lane.b32.xlu1 %v2489_v16, %s3449_s14  ;;  %712 = vrot.lane.b32.xlu0 %v2489_v16, %s2352_s15  ;;  %s3460_s14 = smov 77  }
  0xec   : > { %677 = vrot.lane.b32.xlu1 %v2489_v16, %s2353_s16  ;;  %642 = vrot.lane.b32.xlu0 %v2489_v16, %s2354_s19 }
  0xf0   : > { %605 = vrot.lane.b32.xlu1 %v2489_v16, %s3456_s28  ;;  %570 = vrot.lane.b32.xlu0 %v2489_v16, %s3457_s26 }
  0xf4   : > { %535 = vrot.lane.b32.xlu1 %v2489_v16, %s3458_s13  ;;  %500 = vrot.lane.b32.xlu0 %v2489_v16, %s3459_s29 }
  0xf8   : > { %1314 = vrot.lane.b32.xlu1 %v2489_v16, %s3460_s14  ;;  %1279 = vrot.lane.b32.xlu0 %v2489_v16, %s2360_s12 }
  0xfc   : > { %1244 = vrot.lane.b32.xlu1 %v2489_v16, %s2361_s22  ;;  %1209 = vrot.lane.b32.xlu0 %v2489_v16, %s3450_s20  ;;  %s3461_s20 = smov 34  }
 0x100   : > { %1172 = vrot.lane.b32.xlu1 %v2489_v16, %s3451_s24  ;;  %1137 = vrot.lane.b32.xlu0 %v2489_v16, %s2364_s25  ;;  %s3462_s24 = smov 126  }
 0x104   : > { %1102 = vrot.lane.b32.xlu1 %v2489_v16, %s3452_s23  ;;  %1067 = vrot.lane.b32.xlu0 %v2489_v16, %s3453_s30  ;;  %s3463_s23 = smov 111   ;;  %s3464_s30 = smov 2  }
 0x108   : > { %855 = vrot.lane.b32.xlu1 %v2491_v18, %s2347_s27  ;;  %962 = vrot.lane.b32.xlu0 %v2491_v18, %s2345_s21  ;;  %s3465_s21 = smov 32   ;;  %s2367_s27 = smov 94  }
 0x10c   : > { %786 = vrot.lane.b32.xlu1 %v2491_v18, %s3461_s20  ;;  %927 = vrot.lane.b32.xlu0 %v2491_v18, %s3462_s24 }
 0x110   : > { %749 = vrot.lane.b32.xlu1 %v2491_v18, %s3463_s23  ;;  %890 = vrot.lane.b32.xlu0 %v2491_v18, %s3464_s30 }
 0x114   : > { %679 = vrot.lane.b32.xlu1 %v2491_v18, %s2353_s16  ;;  %821 = vrot.lane.b32.xlu0 %v2491_v18, %s3465_s21 }
 0x118   : > { %572 = vrot.lane.b32.xlu1 %v2491_v18, %s3457_s26  ;;  %714 = vrot.lane.b32.xlu0 %v2491_v18, %s2352_s15  ;;  %s3466_s26 = smov 51   ;;  %s2368_s15 = smov 96  }
 0x11c   : > { %1030 = vrot.lane.b32.xlu1 %v2489_v16, %s2367_s27  ;;  %644 = vrot.lane.b32.xlu0 %v2491_v18, %s2354_s19 }
 0x120   : > { %502 = vrot.lane.b32.xlu1 %v2491_v18, %s3459_s29  ;;  %607 = vrot.lane.b32.xlu0 %v2491_v18, %s3456_s28  ;;  %s3467_s28 = smov 125  }
 0x124   : > { %1316 = vrot.lane.b32.xlu1 %v2491_v18, %s3460_s14  ;;  %537 = vrot.lane.b32.xlu0 %v2491_v18, %s3458_s13  ;;  %s3468_s13 = smov 3   ;;  %s3469_s14 = smov 48  }
 0x128   : > { %1246 = vrot.lane.b32.xlu1 %v2491_v18, %s2361_s22  ;;  %1034 = vrot.lane.b32.xlu0 %v2442_v3, %s2367_s27  ;;  %s3525_s22 = sshll.u32 %s3527_s18, 6 }
 0x12c   : > { %1139 = vrot.lane.b32.xlu1 %v2491_v18, %s2364_s25  ;;  %1281 = vrot.lane.b32.xlu0 %v2491_v18, %s2360_s12 }
 0x130   : > { %1069 = vrot.lane.b32.xlu1 %v2491_v18, %s3466_s26  ;;  %1211 = vrot.lane.b32.xlu0 %v2491_v18, %s3467_s28 }
 0x134   : > { %1032 = vrot.lane.b32.xlu1 %v2491_v18, %s2367_s27  ;;  %1174 = vrot.lane.b32.xlu0 %v2491_v18, %s3468_s13 }
 0x138   : > { %1104 = vrot.lane.b32.xlu0 %v2491_v18, %s3469_s14  ;;  %999 = vrot.lane.b32.xlu1 %v2442_v3, %s2368_s15  ;;  %v1525_v3 = vld [vmem:[%s3430_s8 + $0xc8] sm:$0xff]  ;;  %s386_s14 = scalar_lea.vmem %s3433_s11, %s3525_s22 }
 0x139   : > { %2249 = vmatprep.subr.mxu0 %v1525_v3 }
 0x13a   : > { %2250 = vmatpush3.msra.mxu0 %v1509_v4  ;;  %v2782_v4 = vsub.s32 0, %v486_v57  ;;  %v2127_v57 = vld [vmem:[%s3432_s10 + $0x11] ss:$8 sm:$0x3] }
 0x13b   : > { %2251 = vmatprep.subr.mxu0 %v1524_v5  ;;  %v946_v5 = vsel %vm945_vm2, 1, %v2344_v2  ;;  %vm767_vm12 = vcmp.ne.f32.partialorder %v2127_v57, 0.0  ;;  %vm857_vm2 = vcmask 244736   ;;  %v2124_v57 = vld [vmem:[%s3432_s10 + $0x6] ss:$8 sm:$0x3] }
 0x13c   : > { %997 = vrot.lane.b32.xlu0 %v2491_v18, %s2368_s15  ;;  %1394 = vperm.xlu1 %2313, %v1389_v42   ;;  %v1504_v42 = vld [vmem:[%s3430_s8 + $0x20] sm:$0xff] }
 0x13d   : > { %2252 = vmatpush3.msra.mxu0 %v1508_v8  ;;  %v2130_v8 = vld [vmem:[%s3432_s10 + $0x14] ss:$8 sm:$0x3] }
 0x13e   : > { %2253 = vmatprep.subr.mxu0 %v1523_v9  ;;  %v954_v9 = vrot.slane %v946_v5, %v2776_v61  ;;  %vm871_vm4 = vcmp.ne.f32.partialorder %v2130_v8, 0.0 }
 0x13f   : > { %2254 = vmatpush3.msra.mxu0 %v1507_v10  ;;  %v872_v54 = vsel %vm871_vm4, 1, %v2344_v2 }
 0x140   : > { %995 = vrot.lane.b32.xlu0 %v2489_v16, %s2368_s15  ;;  %1404 = vperm.xlu1 %2313, %v1391_v48   ;;  %vm956_vm6 = vcmp.eq.s32.totalorder %v954_v9, 1  ;;  %v2126_v9 = vld [vmem:[%s3432_s10 + $0x10] ss:$8 sm:$0x3] }
 0x141   : > { %2255 = vmatprep.subr.mxu0 %v1522_v11  ;;  %vm732_vm14 = vcmp.ne.f32.partialorder %v2126_v9, 0.0 }
 0x142   : > { %2256 = vmatpush3.msra.mxu0 %v1506_v14  ;;  %v950_v14 = vrot.slane %v946_v5, %v2782_v4 }
 0x143   : > { %2257 = vmatprep.subr.mxu0 %v1521_v15 }
 0x144   : > { %1399 = vperm.xlu0 %2312, %v1390_v38   ;;  %1932 = vperm.xlu1 %2313, %v1922_v53   ;;  %vm955_vm8 = vcmp.eq.s32.totalorder %v950_v14, 1  ;;  %v880_v14 = vrot.slane %v872_v54, %v2776_v61 }
 0x145   : > { %2258 = vmatpush3.msra.mxu0 %v1505_v17  ;;  %v2129_v17 = vld [vmem:[%s3432_s10 + $0x13] ss:$8 sm:$0x3] }
 0x146   : > { %2259 = vmatprep.subr.mxu0 %v1520_v33  ;;  %v2128_v33 = vld [vmem:[%s3432_s10 + $0x12] ss:$8 sm:$0x3]  ;;  %vm836_vm7 = vcmp.ne.f32.partialorder %v2129_v17, 0.0  ;;  %vm2829_vm4 = vcmp.eq.s32.totalorder %v880_v14, 1 }
 0x147   : > { %2260 = vmatpush3.msra.mxu0 %v1504_v42  ;;  %vm802_vm9 = vcmp.ne.f32.partialorder %v2128_v33, 0.0  ;;  %v837_v8 = vsel %vm836_vm7, 1, %v2344_v2  ;;  %v2125_v33 = vld [vmem:[%s3432_s10 + $0x7] ss:$8 sm:$0x3] }
 0x148   : > { %1927 = vperm.xlu0 %2312, %v1921_v41   ;;  %1942 = vperm.xlu1 %2313, %v1924_v60   ;;  %v2131_v60 = vld [vmem:[%s3432_s10 + $0x16] ss:$8 sm:$0x3]  ;;  %v2123_v14 = vld [vmem:[%s3432_s10 + $0x5] ss:$8 sm:$0x3] }
 0x149   : > { %2261 = vmatprep.subr.mxu0 %v1519_v45  ;;  %vm910_vm3 = vcmp.ne.f32.partialorder %v2131_v60, 0.0 }
 0x14a   : > { %2262 = vmatpush3.msra.mxu0 %v1503_v46  ;;  %v911_v15 = vsel %vm910_vm3, 1, %v2344_v2  ;;  %vm788_vm3 = vcmask 277504  }
 0x14b   : > { %v919_v42 = vrot.slane %v911_v15, %v2776_v61  ;;  %v915_v51 = vrot.slane %v911_v15, %v2782_v4 }
 0x14c   : > { %1937 = vperm.xlu0 %2312, %v1923_v47  }
 0x14d   : > { %vm921_vm11 = vcmp.eq.s32.totalorder %v919_v42, 1  ;;  %vm920_vm13 = vcmp.eq.s32.totalorder %v915_v51, 1  ;;  %v845_v42 = vrot.slane %v837_v8, %v2776_v61  ;;  %v841_v51 = vrot.slane %v837_v8, %v2782_v4 }
 0x14e   : > { %v2674_v55 = vpop.permute.xlu1 %960  ;;  %v2676_v56 = vpop.permute.xlu0 %925 }
 0x152   : > { %v2693_v62 = vpop.permute.xlu1 %888  ;;  %v2695_v63 = vpop.permute.xlu0 %853 }
 0x156   : > { %v2709_v6 = vpop.permute.xlu1 %819  ;;  %v2711_v7 = vpop.permute.xlu0 %784 }
 0x15a   : > { %v2725_v12 = vpop.permute.xlu1 %747  ;;  %v2727_v13 = vpop.permute.xlu0 %712 }
 0x15e   : > { %v2741_v38 = vpop.permute.xlu1 %677  ;;  %v2743_v41 = vpop.permute.xlu0 %642 }
 0x162   : > { %v2754_v47 = vpop.permute.xlu1 %605  ;;  %v2756_v48 = vpop.permute.xlu0 %570 }
 0x166   : > { %v2758_v49 = vpop.permute.xlu1 %535  ;;  %v2760_v50 = vpop.permute.xlu0 %500 }
 0x16a   : > { %v2762_v52 = vpop.permute.xlu1 %1314  ;;  %v2764_v53 = vpop.permute.xlu0 %1279 }
 0x16e   : > { %v2769_v58 = vpop.permute.xlu1 %1244  ;;  %v2771_v59 = vpop.permute.xlu0 %1209 }
 0x172   : > { %v2778_v0 = vpop.permute.xlu1 %1172  ;;  %v2780_v3 = vpop.permute.xlu0 %1137 }
 0x176   : > { %v2789_v10 = vpop.permute.xlu1 %1102  ;;  %v2791_v11 = vpop.permute.xlu0 %1067 }
 0x17a   : > { %v856_v45 = vpop.permute.xlu1 %855  ;;  %v963_v46 = vpop.permute.xlu0 %962 }
 0x17b   : > { %v967_v60 = vsel %vm966_vm5, %v2674_v55, %v963_v46  ;;  %v968_v5 = vsel %vm966_vm5, %v963_v46, %v2537_v19  ;;  %v876_v19 = vrot.slane %v872_v54, %v2782_v4  ;;  %v803_v55 = vsel %vm802_vm9, 1, %v2344_v2 }
 0x17c   : > { %2189 = vmatprep.subr.msk.mxu1 %vm956_vm6, %v968_v5  ;;  %v768_v54 = vsel %vm767_vm12, 1, %v2344_v2  ;;  %vm697_vm5 = vcmp.ne.f32.partialorder %v2125_v33, 0.0  ;;  %vm753_vm6 = vcmask 908288   ;;  %vm662_vm9 = vcmp.ne.f32.partialorder %v2124_v57, 0.0 }
 0x17d   : > { %2190 = vmatpush1.msk.msra.mxu1 %vm955_vm8, %v967_v60  ;;  %vm881_vm7 = vcmp.eq.s32.totalorder %v876_v19, 1  ;;  %vm847_vm8 = vcmp.eq.s32.totalorder %v845_v42, 1  ;;  %v776_v1 = vrot.slane %v768_v54, %v2776_v61  ;;  %v893_v19 = vsel %vm892_vm15, %v2553_v21, %v2693_v62  ;;  %v482_v33 = vld [vmem:[%s3432_s10] ss:$8 sm:$0x3] }
 0x17e   : > { %v2814_v15 = vpop.permute.xlu1 %786  ;;  %v928_v17 = vpop.permute.xlu0 %927  ;;  %v859_v42 = vsel %vm857_vm2, %v2695_v63, %v856_v45  ;;  %vm627_vm12 = vcmp.ne.f32.partialorder %v2123_v14, 0.0  ;;  %v789_v14 = vsel %vm788_vm3, %v2567_v24, %v2711_v7 }
 0x17f   : > { %v932_v46 = vsel %vm931_vm10, %v2676_v56, %v928_v17  ;;  %v933_v60 = vsel %vm931_vm10, %v928_v17, %v2547_v20  ;;  %v811_v20 = vrot.slane %v803_v55, %v2776_v61  ;;  %v807_v17 = vrot.slane %v803_v55, %v2782_v4 }
 0x180   : > { %2191 = vmatprep.subr.msk.mxu1 %vm921_vm11, %v933_v60  ;;  %v733_v60 = vsel %vm732_vm14, 1, %v2344_v2  ;;  %vm2850_vm10 = vcmp.eq.s32.totalorder %v841_v51, 1  ;;  %v772_v55 = vrot.slane %v768_v54, %v2782_v4  ;;  %v663_v56 = vsel %vm662_vm9, 1, %v2344_v2 }
 0x181   : > { %2192 = vmatpush1.msk.msra.mxu1 %vm920_vm13, %v932_v46  ;;  %vm2859_vm11 = vcmp.eq.s32.totalorder %v811_v20, 1  ;;  %v741_v21 = vrot.slane %v733_v60, %v2776_v61  ;;  %vm2867_vm13 = vcmp.eq.s32.totalorder %v807_v17, 1  ;;  %v737_v45 = vrot.slane %v733_v60, %v2782_v4  ;;  %v2122_v20 = vld [vmem:[%s3432_s10 + $0x3] ss:$8 sm:$0x3] }
 0x182   : > { %v750_v5 = vpop.permute.xlu1 %749  ;;  %1421 = vmatprep.subr.mxu1 %v2491_v18  ;;  %v891_v8 = vpop.permute.xlu0 %890  ;;  %vm683_vm14 = vcmask 924672   ;;  %v823_v17 = vsel %vm402_vm0, %v2565_v23, %v2709_v6  ;;  %v790_v23 = vsel %vm788_vm3, %v2711_v7, %v2814_v15  ;;  %v2140_v15 = vld [vmem:[%s3432_s10 + $0x30] ss:$8 sm:$0x3] }
 0x183   : > { %v894_v46 = vsel %vm892_vm15, %v2693_v62, %v891_v8  ;;  %1422 = vmatpush1.msra.mxu1 %v2489_v16  ;;  %v698_v8 = vsel %vm697_vm5, 1, %v2344_v2  ;;  %v858_v62 = vsel %vm857_vm2, %v2555_v22, %v2695_v63  ;;  %vm778_vm15 = vcmp.eq.s32.totalorder %v776_v1, 1  ;;  %v2121_v1 = vld [vmem:[%s3432_s10 + $0x2] ss:$8 sm:$0x3] }
 0x184   : > { %2193 = vmatprep.subr.msk.mxu1 %vm2829_vm4, %v894_v46  ;;  %v706_v63 = vrot.slane %v698_v8, %v2776_v61  ;;  %vm2887_vm2 = vcmp.eq.s32.totalorder %v772_v55, 1  ;;  %v702_v60 = vrot.slane %v698_v8, %v2782_v4  ;;  %v628_v46 = vsel %vm627_vm12, 1, %v2344_v2  ;;  %v2120_v8 = vld [vmem:[%s3432_s10 + $0x1] ss:$8 sm:$0x3] }
 0x185   : > { %2194 = vmatpush1.msk.msra.mxu1 %vm881_vm7, %v893_v19  ;;  %vm588_vm4 = vcmp.ne.f32.partialorder %v2122_v20, 0.0  ;;  %vm718_vm5 = vcmask 916480   ;;  %vm2912_vm7 = vcmp.eq.s32.totalorder %v737_v45, 1  ;;  %v667_v55 = vrot.slane %v663_v56, %v2782_v4 }
 0x186   : > { %v680_v51 = vpop.permute.xlu1 %679  ;;  %2195 = vmatprep.subr.msk.mxu1 %vm847_vm8, %v859_v42  ;;  %v822_v54 = vpop.permute.xlu0 %821  ;;  %v755_v42 = vsel %vm753_vm6, %v750_v5, %v2574_v26  ;;  %vm2924_vm3 = vcmp.eq.s32.totalorder %v706_v63, 1  ;;  %v636_v7 = vrot.slane %v628_v46, %v2776_v61  ;;  %vm553_vm8 = vcmp.ne.f32.partialorder %v2121_v1, 0.0  ;;  %v2142_v63 = vld [vmem:[%s3432_s10 + $0x32] ss:$8 sm:$0x3] }
 0x187   : > { %v824_v22 = vsel %vm402_vm0, %v2709_v6, %v822_v54  ;;  %2196 = vmatpush1.msk.msra.mxu1 %vm2850_vm10, %v858_v62  ;;  %vm2902_vm0 = vcmp.eq.s32.totalorder %v741_v21, 1  ;;  %v671_v6 = vrot.slane %v663_v56, %v2776_v61  ;;  %v754_v21 = vsel %vm753_vm6, %v2725_v12, %v750_v5 }
 0x188   : > { %2197 = vmatprep.subr.msk.mxu1 %vm2859_vm11, %v824_v22  ;;  %vm2933_vm9 = vcmp.eq.s32.totalorder %v702_v60, 1  ;;  %v632_v26 = vrot.slane %v628_v46, %v2782_v4  ;;  %v589_v54 = vsel %vm588_vm4, 1, %v2344_v2  ;;  %vm609_vm10 = vcmask 7168  }
 0x189   : > { %2198 = vmatpush1.msk.msra.mxu1 %vm2867_vm13, %v823_v17  ;;  %vm2947_vm6 = vcmp.eq.s32.totalorder %v671_v6, 1  ;;  %vm518_vm11 = vcmp.ne.f32.partialorder %v2120_v8, 0.0  ;;  %vm648_vm12 = vcmask 1039360   ;;  %vm2957_vm13 = vcmp.eq.s32.totalorder %v667_v55, 1 }
 0x18a   : > { %v2910_v19 = vpop.permute.xlu1 %572  ;;  %2199 = vmatprep.subr.msk.mxu1 %vm778_vm15, %v790_v23  ;;  %v715_v9 = vpop.permute.xlu0 %714  ;;  %v554_v22 = vsel %vm553_vm8, 1, %v2344_v2  ;;  %vm2970_vm15 = vcmp.eq.s32.totalorder %v636_v7, 1  ;;  %v597_v57 = vrot.slane %v589_v54, %v2776_v61  ;;  %v684_v60 = vsel %vm683_vm14, %v2741_v38, %v680_v51  ;;  %v2141_v23 = vld [vmem:[%s3432_s10 + $0x31] ss:$8 sm:$0x3] }
 0x18b   : > { %2200 = vmatpush1.msk.msra.mxu1 %vm2887_vm2, %v789_v14  ;;  %v720_v12 = vsel %vm718_vm5, %v715_v9, %v2572_v25  ;;  %v719_v45 = vsel %vm718_vm5, %v2727_v13, %v715_v9  ;;  %v685_v13 = vsel %vm683_vm14, %v680_v51, %v2586_v28  ;;  %vm483_vm2 = vcmp.ne.f32.partialorder %v482_v33, 0.0  ;;  %v2139_v7 = vld [vmem:[%s3432_s10 + $0x27] ss:$8 sm:$0x3] }
 0x18c   : > { %2201 = vmatprep.subr.msk.mxu1 %vm2902_vm0, %v755_v42  ;;  %vm2979_vm0 = vcmp.eq.s32.totalorder %v632_v26, 1  ;;  %v593_v28 = vrot.slane %v589_v54, %v2782_v4  ;;  %v519_v1 = vsel %vm518_vm11, 1, %v2344_v2  ;;  %vm574_vm4 = vcmask 121856  }
 0x18d   : > { %2202 = vmatpush1.msk.msra.mxu1 %vm2912_vm7, %v754_v21  ;;  %v562_v51 = vrot.slane %v554_v22, %v2776_v61  ;;  %vm1299_vm14 = vcmp.ne.f32.partialorder %v2142_v63, 0.0  ;;  %vm539_vm5 = vcmask 130048   ;;  %v558_v9 = vrot.slane %v554_v22, %v2782_v4 }
 0x18e   : > { %v2953_v56 = vpop.permute.xlu1 %1030  ;;  %2203 = vmatprep.subr.msk.mxu1 %vm2924_vm3, %v720_v12  ;;  %v645_v20 = vpop.permute.xlu0 %644  ;;  %vm504_vm7 = vcmask 138240   ;;  %vm3006_vm3 = vcmp.eq.s32.totalorder %v597_v57, 1  ;;  %v527_v55 = vrot.slane %v519_v1, %v2776_v61  ;;  %vm1264_vm8 = vcmp.ne.f32.partialorder %v2141_v23, 0.0 }
 0x18f   : > { %2204 = vmatpush1.msk.msra.mxu1 %vm2933_vm9, %v719_v45  ;;  %v650_v38 = vsel %vm648_vm12, %v645_v20, %v2584_v27  ;;  %v649_v44 = vsel %vm648_vm12, %v2743_v41, %v645_v20  ;;  %v484_v27 = vsel %vm483_vm2, 1, %v2344_v2  ;;  %vm1320_vm9 = vcmask 629760  }
 0x190   : > { %2205 = vmatprep.subr.msk.mxu1 %vm2947_vm6, %v685_v13  ;;  %vm3012_vm6 = vcmp.eq.s32.totalorder %v593_v28, 1  ;;  %v523_v42 = vrot.slane %v519_v1, %v2782_v4  ;;  %v1300_v24 = vsel %vm1299_vm14, 1, %v2344_v2  ;;  %vm3025_vm11 = vcmp.eq.s32.totalorder %v562_v51, 1  ;;  %v2138_v13 = vld [vmem:[%s3432_s10 + $0x25] ss:$8 sm:$0x3] }
 0x191   : > { %2206 = vmatpush1.msk.msra.mxu1 %vm2957_vm13, %v684_v60  ;;  %v492_v26 = vrot.slane %v484_v27, %v2776_v61  ;;  %vm1229_vm12 = vcmp.ne.f32.partialorder %v2140_v15, 0.0  ;;  %v610_v54 = vsel %vm609_vm10, %v2591_v29, %v2754_v47  ;;  %vm563_vm13 = vcmp.eq.s32.totalorder %v558_v9, 1  ;;  %v2136_v9 = vld [vmem:[%s3432_s10 + $0x23] ss:$8 sm:$0x3] }
 0x192   : > { %v503_v6 = vpop.permute.xlu1 %502  ;;  %2207 = vmatprep.subr.msk.mxu1 %vm2970_vm15, %v650_v38  ;;  %v608_v14 = vpop.permute.xlu0 %607  ;;  %v488_v5 = vrot.slane %v484_v27, %v2782_v4  ;;  %v1265_v45 = vsel %vm1264_vm8, 1, %v2344_v2  ;;  %v576_v20 = vsel %vm574_vm4, %v2756_v48, %v2910_v19  ;;  %vm3043_vm15 = vcmp.eq.s32.totalorder %v527_v55, 1  ;;  %v2137_v38 = vld [vmem:[%s3432_s10 + $0x24] ss:$8 sm:$0x3] }
 0x193   : > { %2208 = vmatpush1.msk.msra.mxu1 %vm2979_vm0, %v649_v44  ;;  %v611_v21 = vsel %vm609_vm10, %v2754_v47, %v608_v14  ;;  %v1308_v47 = vrot.slane %v1300_v24, %v2776_v61  ;;  %vm1194_vm10 = vcmp.ne.f32.partialorder %v2139_v7, 0.0  ;;  %v575_v25 = vsel %vm574_vm4, %v2593_v30, %v2756_v48 }
 0x194   : > { %1439 = vmatprep.subr.mxu1 %v2491_v18  ;;  %vm3053_vm2 = vcmp.eq.s32.totalorder %v523_v42, 1  ;;  %v1304_v19 = vrot.slane %v1300_v24, %v2782_v4  ;;  %v1230_v63 = vsel %vm1229_vm12, 1, %v2344_v2  ;;  %vm1250_vm0 = vcmask 678912   ;;  %v2135_v42 = vld [vmem:[%s3432_s10 + $0x22] ss:$8 sm:$0x3] }
 0x195   : > { %1440 = vmatpush1.msra.mxu1 %v2489_v16  ;;  %vm3065_vm4 = vcmp.eq.s32.totalorder %v492_v26, 1  ;;  %v1273_v48 = vrot.slane %v1265_v45, %v2776_v61  ;;  %v540_v57 = vsel %vm539_vm5, %v2603_v31, %v2758_v49  ;;  %vm3077_vm14 = vcmp.eq.s32.totalorder %v488_v5, 1 }
 0x196   : > { %v1317_v33 = vpop.permute.xlu1 %1316  ;;  %2209 = vmatprep.subr.msk.mxu1 %vm3006_vm3, %v611_v21  ;;  %v538_v12 = vpop.permute.xlu0 %537  ;;  %v1269_v1 = vrot.slane %v1265_v45, %v2782_v4  ;;  %v1195_v23 = vsel %vm1194_vm10, 1, %v2344_v2  ;;  %v506_v31 = vsel %vm504_vm7, %v2760_v50, %v503_v6  ;;  %v1238_v51 = vrot.slane %v1230_v63, %v2776_v61  ;;  %v1334_v6 = vld [vmem:[%s3425_s3 + $0x28] sm:$0xff] }
 0x197   : > { %2210 = vmatpush1.msk.msra.mxu1 %vm3012_vm6, %v610_v54  ;;  %v541_v17 = vsel %vm539_vm5, %v2758_v49, %v538_v12  ;;  %vm3091_vm5 = vcmp.eq.s32.totalorder %v1308_v47, 1  ;;  %vm1155_vm3 = vcmp.ne.f32.partialorder %v2138_v13, 0.0  ;;  %v505_v44 = vsel %vm504_vm7, %v2605_v32, %v2760_v50  ;;  %v1517_v32 = vld [vmem:[%s3430_s8 + $0x88] sm:$0xff] }
 0x198   : > { %2211 = vmatprep.subr.msk.mxu1 %vm3025_vm11, %v576_v20  ;;  %vm1285_vm8 = vcmask 654336   ;;  %vm3101_vm6 = vcmp.eq.s32.totalorder %v1304_v19, 1  ;;  %v1234_v14 = vrot.slane %v1230_v63, %v2782_v4  ;;  %v1322_v27 = vsel %vm1320_vm9, %v1317_v33, %v2616_v35 }
 0x199   : > { %2212 = vmatpush1.msk.msra.mxu1 %vm563_vm13, %v575_v25  ;;  %vm3113_vm7 = vcmp.eq.s32.totalorder %v1273_v48, 1  ;;  %v1203_v50 = vrot.slane %v1195_v23, %v2776_v61  ;;  %vm1120_vm11 = vcmp.ne.f32.partialorder %v2137_v38, 0.0  ;;  %v1321_v15 = vsel %vm1320_vm9, %v2762_v52, %v1317_v33  ;;  %v3523_v38 = vld [vmem:[#allocation5_spill] sm:$0xff] }
 0x19a   : > { %v1247_v60 = vpop.permute.xlu1 %1246  ;;  %2213 = vmatprep.subr.msk.mxu1 %vm3043_vm15, %v541_v17  ;;  %v3075_v46 = vpop.permute.xlu0 %1034  ;;  %vm1274_vm12 = vcmp.eq.s32.totalorder %v1269_v1, 1  ;;  %v1199_v35 = vrot.slane %v1195_v23, %v2782_v4  ;;  %v1156_v8 = vsel %vm1155_vm3, 1, %v2344_v2  ;;  %vm1240_vm9 = vcmp.eq.s32.totalorder %v1238_v51, 1 }
 0x19b   : > { %2214 = vmatpush1.msk.msra.mxu1 %vm3053_vm2, %v540_v57  ;;  %vm1085_vm13 = vcmp.ne.f32.partialorder %v2136_v9, 0.0  ;;  %vm1215_vm15 = vcmask 1022976   ;;  %vm3136_vm10 = vcmp.eq.s32.totalorder %v1234_v14, 1  ;;  %v1121_v21 = vsel %vm1120_vm11, 1, %v2344_v2  ;;  %v1333_v14 = vld [vmem:[%s3425_s3 + $0x20] sm:$0xff]  ;;  %v1518_v9 = vld [vmem:[%s3430_s8 + $0x90] sm:$0xff] }
 0x19c   : > { %2215 = vmatprep.subr.msk.mxu1 %vm3065_vm4, %v506_v31  ;;  %vm3147_vm2 = vcmp.eq.s32.totalorder %v1203_v50, 1  ;;  %v1164_v26 = vrot.slane %v1156_v8, %v2776_v61  ;;  %vm1050_vm4 = vcmp.ne.f32.partialorder %v2135_v42, 0.0  ;;  %v1251_v54 = vsel %vm1250_vm0, %v2769_v58, %v1247_v60  ;;  %2263 = vmatprep.subr.mxu0 %v1518_v9  ;;  %v1501_v50 = vld [vmem:[%s3430_s8 + $0x8] sm:$0xff] }
 0x19d   : > { %2216 = vmatpush1.msk.msra.mxu1 %vm3077_vm14, %v505_v44  ;;  %vm1204_vm14 = vcmp.eq.s32.totalorder %v1199_v35, 1  ;;  %v1160_v12 = vrot.slane %v1156_v8, %v2782_v4  ;;  %v1086_v5 = vsel %vm1085_vm13, 1, %v2344_v2  ;;  %v1129_v58 = vrot.slane %v1121_v21, %v2776_v61 }
 0x19e   : > { %v1140_v41 = vpop.permute.xlu1 %1139  ;;  %2217 = vmatprep.subr.msk.mxu1 %vm3091_vm5, %v1322_v27  ;;  %v1282_v55 = vpop.permute.xlu0 %1281  ;;  %v1125_v47 = vrot.slane %v1121_v21, %v2782_v4  ;;  %v1051_v25 = vsel %vm1050_vm4, 1, %v2344_v2  ;;  %vm1176_vm5 = vcmask 23552   ;;  %vm1166_vm3 = vcmp.eq.s32.totalorder %v1164_v26, 1  ;;  %v1502_v27 = vld [vmem:[%s3430_s8 + $0x10] sm:$0xff] }
 0x19f   : > { %v1286_v24 = vsel %vm1285_vm8, %v2764_v53, %v1282_v55  ;;  %v1287_v52 = vsel %vm1285_vm8, %v1282_v55, %v2614_v34  ;;  %2218 = vmatpush2.msk.msra.mxu1 %vm3101_vm6, %v1321_v15  ;;  %v2134_v34 = vld [vmem:[%s3432_s10 + $0x21] ss:$8 sm:$0x3]  ;;  %v1252_v53 = vsel %vm1250_vm0, %v1247_v60, %v2624_v37  ;;  %v2133_v37 = vld [vmem:[%s3432_s10 + $0x20] ss:$8 sm:$0x3]  ;;  %v1090_v22 = vrot.slane %v1086_v5, %v2782_v4 }
 0x1a0   : > { %2219 = vmatprep.subr.msk.mxu1 %vm3113_vm7, %v1287_v52  ;;  %vm1015_vm0 = vcmp.ne.f32.partialorder %v2134_v34, 0.0  ;;  %vm980_vm8 = vcmp.ne.f32.partialorder %v2133_v37, 0.0  ;;  %vm1165_vm6 = vcmp.eq.s32.totalorder %v1160_v12, 1  ;;  %vm1141_vm7 = vcmask 367616   ;;  %2264 = vmatpush3.msra.mxu0 %v1502_v27  ;;  %v1516_v15 = vld [vmem:[%s3430_s8 + $0x80] sm:$0xff]  ;;  %v2158_v27 = vld [vmem:[%s3427_s5 + $0x88] sm:$0xff] }
 0x1a1   : > { %2220 = vmatpush2.msk.msra.mxu1 %vm1274_vm12, %v1286_v24  ;;  %v1016_v19 = vsel %vm1015_vm0, 1, %v2344_v2  ;;  %vm1131_vm11 = vcmp.eq.s32.totalorder %v1129_v58, 1  ;;  %v1059_v13 = vrot.slane %v1051_v25, %v2776_v61  ;;  %v1177_v17 = vsel %vm1176_vm5, %v2630_v39, %v2778_v0  ;;  %2265 = vmatprep.subr.mxu0 %v1517_v32  ;;  %v1814_v37 = vld [vmem:[%s3431_s9] sm:$0xff]  ;;  %v2162_v32 = vld [vmem:[%s3427_s5 + $0xa8] sm:$0xff] }
 0x1a2   : > { %2221 = vmatprep.subr.msk.mxu1 %vm1240_vm9, %v1252_v53  ;;  %v1212_v33 = vpop.permute.xlu0 %1211  ;;  %v1070_v29 = vpop.permute.xlu1 %1069  ;;  %vm3181_vm12 = vcmp.eq.s32.totalorder %v1125_v47, 1  ;;  %v1055_v30 = vrot.slane %v1051_v25, %v2782_v4  ;;  %v981_v48 = vsel %vm980_vm8, 1, %v2344_v2  ;;  %vm1106_vm9 = vcmask 392192   ;;  %2266 = vmatpush3.msra.mxu0 %v1501_v50  ;;  %v2163_v50 = vld [vmem:[%s3427_s5 + $0xb0] sm:$0xff] }
 0x1a3   : > { %v1216_v45 = vsel %vm1215_vm15, %v2771_v59, %v1212_v33  ;;  %v1217_v20 = vsel %vm1215_vm15, %v1212_v33, %v2622_v36  ;;  %2222 = vmatpush2.msk.msra.mxu1 %vm3136_vm10, %v1251_v54  ;;  %v1094_v36 = vrot.slane %v1086_v5, %v2776_v61  ;;  %v1143_v57 = vsel %vm1141_vm7, %v2780_v3, %v1140_v41  ;;  %v1500_v41 = vld [vmem:[%s3430_s8] sm:$0xff] }
 0x1a4   : > { %2223 = vmatprep.subr.msk.mxu1 %vm3147_vm2, %v1217_v20  ;;  %v1142_v60 = vsel %vm1141_vm7, %v2632_v40, %v2780_v3  ;;  %vm1095_vm15 = vcmp.eq.s32.totalorder %v1090_v22, 1  ;;  %v1020_v28 = vrot.slane %v1016_v19, %v2782_v4  ;;  %vm1071_vm10 = vcmask 416768   ;;  %2267 = vmatprep.subr.mxu0 %v1516_v15 }
 0x1a5   : > { %2224 = vmatpush2.msk.msra.mxu1 %vm1204_vm14, %v1216_v45  ;;  %vm1096_vm13 = vcmp.eq.s32.totalorder %v1094_v36, 1  ;;  %vm1061_vm2 = vcmp.eq.s32.totalorder %v1059_v13, 1  ;;  %v989_v1 = vrot.slane %v981_v48, %v2776_v61  ;;  %v1107_v40 = vsel %vm1106_vm9, %v2640_v43, %v2789_v10  ;;  %2268 = vmatpush3.msra.mxu0 %v1500_v41 }
 0x1a6   : > { %1467 = vmatprep.subr.mxu1 %v2491_v18  ;;  %v1175_v59 = vpop.permute.xlu0 %1174  ;;  %v1033_v39 = vpop.permute.xlu1 %1032  ;;  %vm1036_vm4 = vcmask 769024   ;;  %vm1060_vm14 = vcmp.eq.s32.totalorder %v1055_v30, 1  ;;  %v1073_v3 = vsel %vm1071_vm10, %v2791_v11, %v1070_v29  ;;  %v985_v23 = vrot.slane %v981_v48, %v2782_v4  ;;  %v2146_v18 = vld [vmem:[%s3427_s5 + $0x28] sm:$0xff]  ;;  %v2151_v30 = vld [vmem:[%s3427_s5 + $0x50] sm:$0xff]  ;;  %v2156_v48 = vld [vmem:[%s3427_s5 + $0x78] sm:$0xff] }
 0x1a7   : > { %v1178_v63 = vsel %vm1176_vm5, %v2778_v0, %v1175_v59  ;;  %1468 = vmatpush2.msra.mxu1 %v2489_v16  ;;  %v1024_v16 = vrot.slane %v1016_v19, %v2776_v61  ;;  %v1072_v31 = vsel %vm1071_vm10, %v3523_v38, %v2791_v11  ;;  %vm1001_vm5 = vcmask 785408   ;;  %v1329_v11 = vld [vmem:[%s3425_s3] sm:$0xff]  ;;  %v2166_v38 = vld [vmem:[%s3427_s5 + $0xc8] sm:$0xff] }
 0x1a8   : > { %2225 = vmatprep.subr.msk.mxu1 %vm1166_vm3, %v1178_v63  ;;  %vm1025_vm3 = vcmp.eq.s32.totalorder %v1020_v28, 1  ;;  %v1038_v43 = vsel %vm1036_vm4, %v1033_v39, %v3075_v46  ;;  %vm991_vm8 = vcmp.eq.s32.totalorder %v989_v1, 1  ;;  %v1332_v46 = vld [vmem:[%s3425_s3 + $0x18] sm:$0xff]  ;;  %v3524_v5 = vmov 0.0   ;;  %v1628_v1 = vld [vmem:[%s3427_s5 + $0x10] sm:$0xff] }
 0x1a9   : > { %2226 = vmatpush2.msk.msra.mxu1 %vm1165_vm6, %v1177_v17  ;;  %vm1026_vm0 = vcmp.eq.s32.totalorder %v1024_v16, 1  ;;  %vm990_vm6 = vcmp.eq.s32.totalorder %v985_v23, 1  ;;  %vm1621_vm7 = vcmask 25600   ;;  %v1816_v45 = vcombine.high %v1814_v37, %v1814_v37  ;;  %v1626_v17 = vld [vmem:[%s3427_s5] sm:$0xff]  ;;  %v1627_v16 = vld [vmem:[%s3427_s5 + $0x8] sm:$0xff] }
 0x1aa   : > { %2227 = vmatprep.subr.msk.mxu1 %vm1131_vm11, %v1143_v57  ;;  %v1105_v0 = vpop.permute.xlu0 %1104  ;;  %v1000_v49 = vpop.permute.xlu1 %999  ;;  %1622 = vst.msk [vmem:[#allocation4 + $0x28] sm:$0x3] %vm1621_vm7, %v3524_v5  ;;  %vm1810_vm11 = vcmask 1043456  }
 0x1ab   : > { %v1108_v2 = vsel %vm1106_vm9, %v2789_v10, %v1105_v0  ;;  %2228 = vmatpush2.msk.msra.mxu1 %vm3181_vm12, %v1142_v60  ;;  %v1037_v10 = vsel %vm1036_vm4, %v2953_v56, %v1033_v39  ;;  %v1331_v56 = vld [vmem:[%s3425_s3 + $0x10] sm:$0xff]  ;;  %2176 = vmatprep.subr.msk.mxu0 %vm1810_vm11, %v1816_v45  ;;  %vm1804_vm12 = vcmask 1041408   ;;  %vm1945_vm9 = vcmask 195584  }
 0x1ac   : > { %2229 = vmatprep.subr.msk.mxu1 %vm1096_vm13, %v1108_v2  ;;  %v2147_v60 = vld [vmem:[%s3427_s5 + $0x30] sm:$0xff]  ;;  %v2161_v2 = vld [vmem:[%s3427_s5 + $0xa0] sm:$0xff] }
 0x1ad   : > { %2230 = vmatpush2.msk.msra.mxu1 %vm1095_vm15, %v1107_v40 }
 0x1ae   : > { %2231 = vmatprep.subr.msk.mxu1 %vm1061_vm2, %v1073_v3  ;;  %v998_v61 = vpop.permute.xlu0 %997 }
 0x1af   : > { %2232 = vmatpush2.msk.msra.mxu1 %vm1060_vm14, %v1072_v31  ;;  %v1003_v51 = vsel %vm1001_vm5, %v998_v61, %v1000_v49  ;;  %v2171_v31 = vld [vmem:[%s3427_s5 + $0xf0] sm:$0xff]  ;;  %v2148_v49 = vld [vmem:[%s3427_s5 + $0x38] sm:$0xff] }
 0x1b0   : > { %2233 = vmatprep.subr.msk.mxu1 %vm1026_vm0, %v1038_v43 }
 0x1b1   : > { %2234 = vmatpush2.msk.msra.mxu1 %vm1025_vm3, %v1037_v10 }
 0x1b2   : > { %2235 = vmatprep.subr.msk.mxu1 %vm991_vm8, %v1003_v51  ;;  %v996_v4 = vpop.permute.xlu0 %995 }
 0x1b3   : > { %v1002_v44 = vsel %vm1001_vm5, %v996_v4, %v998_v61  ;;  %v2152_v61 = vld [vmem:[%s3427_s5 + $0x58] sm:$0xff]  ;;  %v2153_v4 = vld [vmem:[%s3427_s5 + $0x60] sm:$0xff] }
 0x1b4   : > { %2236 = vmatpush2.msk.msra.mxu1 %vm990_vm6, %v1002_v44 }
 0x1b5   : > { %1482 = vmatmul.mubr.f32.vlgmr.msra.gmra.mxu1 %v1329_v11  ;;  %v2157_v11 = vld [vmem:[%s3427_s5 + $0x80] sm:$0xff] }
 0x1b6   : > { %2144 = vmatprep.mubr.msk.f32.mxu1 %vm1407_vm1, %v1332_v46 }
 0x1b7   : > { %v1395_v35 = vpop.permute.xlu1 %1394 }
 0x1b9   : > { %1488 = vmatmul.mubr.f32.gmra.mxu1 %v1331_v56 }
 0x1ba   : > { %2145 = vmatprep.mubr.msk.f32.mxu1 %vm1407_vm1, %v1334_v6  ;;  %vm1615_vm1 = vcmask 31744  }
 0x1bb   : > { %v1405_v26 = vpop.permute.xlu1 %1404  ;;  %1616 = vst.msk [vmem:[#allocation4] sm:$0xff] %vm1615_vm1, %v3524_v5  ;;  %1617 = vst.msk [vmem:[#allocation4 + $0x8] sm:$0xff] %vm1615_vm1, %v3524_v5 }
 0x1bc   : > { %1618 = vst.msk [vmem:[#allocation4 + $0x10] sm:$0xff] %vm1615_vm1, %v3524_v5  ;;  %1619 = vst.msk [vmem:[#allocation4 + $0x18] sm:$0xff] %vm1615_vm1, %v3524_v5 }
 0x1bd   : > { %1494 = vmatmul.mubr.f32.gmra.mxu1 %v1333_v14  ;;  %1620 = vst.msk [vmem:[#allocation4 + $0x20] sm:$0xff] %vm1615_vm1, %v3524_v5 }
 0x1bf   : > { %v1400_v7 = vpop.permute.xlu0 %1399 }
 0x275   : > { %v1483_v55 = vpop.f32.mrf.mxu1 }
 0x276   : > { %v3245_v24 = vadd.f32 %v1483_v55, %v1395_v35 }
 0x277   : > { %v1485_v8 = vpop.f32.mrf.mxu1 }
 0x278   : > { %v3243_v42 = vadd.f32 %v1485_v8, %v1395_v35  ;;  %v2167_v8 = vld [vmem:[%s3427_s5 + $0xd0] sm:$0xff] }
 0x279   : > { %v1489_v52 = vpop.f32.mrf.mxu1 }
 0x27a   : > { %1596 = vmatprep.mubr.f32.mxu0 %v3243_v42  ;;  %v3251_v53 = vadd.f32 %v1489_v52, %v1400_v7  ;;  %v1629_v52 = vld [vmem:[%s3427_s5 + $0x18] sm:$0xff] }
 0x27b   : > { %v1491_v21 = vpop.f32.mrf.mxu1  ;;  %1597 = vmatmul.mubr.f32.vlgmr.msra.gmra.mxu0 %v3245_v24 }
 0x27c   : > { %v3249_v34 = vadd.f32 %v1491_v21, %v1400_v7  ;;  %2177 = vmatpush1.msk.msra.mxu0 %vm1810_vm11, %v1814_v37 }
 0x27d   : > { %v1495_v62 = vpop.f32.mrf.mxu1 }
 0x27e   : > { %1601 = vmatprep.mubr.f32.mxu0 %v3249_v34  ;;  %v3257_v12 = vadd.f32 %v1495_v62, %v1405_v26 }
 0x27f   : > { %v1497_v54 = vpop.f32.mrf.mxu1  ;;  %1602 = vmatmul.mubr.f32.gmra.mxu0 %v3251_v53 }
 0x280   : > { %v3255_v33 = vadd.f32 %v1497_v54, %v1405_v26 }
 0x282   : > { %1606 = vmatprep.mubr.f32.mxu0 %v3255_v33 }
 0x283   : > { %1607 = vmatmul.mubr.f32.gmra.mxu0 %v3257_v12 }
 0x284   : > { %1892 = vmatprep.mubr.f32.mxu0 %v3524_v5 }
 0x33b   : > { %v2269_v20 = vpop.f32.mrf.mxu0 }
 0x33d   : > { %v2270_v58 = vpop.f32.mrf.mxu0 }
 0x33e   : > { %v2271_v29 = vadd.f32 %v2270_v58, %v2269_v20  ;;  %v1630_v20 = vld [vmem:[%s3427_s5 + $0x20] sm:$0xf] }
 0x33f   : > { %v2272_v47 = vpop.f32.mrf.mxu0  ;;  %v2149_v58 = vld [vmem:[%s3427_s5 + $0x40] sm:$0xff] }
 0x340   : > { %v1612_v25 = vmul.f32 0.015625, %v2271_v29  ;;  %v2150_v29 = vld [vmem:[%s3427_s5 + $0x48] sm:$0xf] }
 0x341   : > { %v2273_v36 = vpop.f32.mrf.mxu0 }
 0x342   : > { %1623 = vst.msk [vmem:[#allocation4 + $0x3] sm:$0xff] %vm1615_vm1, %v1612_v25  ;;  %v2274_v59 = vadd.f32 %v2273_v36, %v2272_v47 }
 0x343   : > { %v2275_v22 = vpop.f32.mrf.mxu0 }
 0x344   : > { %v1613_v19 = vmul.f32 0.015625, %v2274_v59 }
 0x345   : > { %v2276_v63 = vpop.f32.mrf.mxu0 }
 0x346   : > { %1624 = vst.msk [vmem:[#allocation4 + $0x11] sm:$0xff] %vm1615_vm1, %v1613_v19  ;;  %v2277_v13 = vadd.f32 %v2276_v63, %v2275_v22  ;;  %v2168_v63 = vld [vmem:[%s3427_s5 + $0xd8] sm:$0xff] }
 0x348   : > { %v1614_v57 = vmul.f32 0.015625, %v2277_v13 }
 0x349   : > { %v1631_v39 = vld [vmem:[#allocation4] sm:$0xff]  ;;  %v1632_v10 = vld [vmem:[#allocation4 + $0x8] sm:$0xff] }
 0x34a   : > { %v1652_v0 = vld [vmem:[#allocation4 + $0x1] sm:$0xff]  ;;  %v1636_v40 = vmul.f32 %v1631_v39, %v1626_v17  ;;  %1625 = vst.msk [vmem:[#allocation4 + $0x1f] sm:$0xff] %vm1615_vm1, %v1614_v57  ;;  %v1653_v51 = vld [vmem:[#allocation4 + $0x9] sm:$0xff]  ;;  %v1637_v14 = vmul.f32 %v1632_v10, %v1627_v16 }
 0x34b   : > { %v1673_v28 = vld [vmem:[#allocation4 + $0x2] sm:$0xff]  ;;  %v1657_v3 = vmul.f32 %v2146_v18, %v1652_v0  ;;  %v1658_v9 = vmul.f32 %v2147_v60, %v1653_v51  ;;  %v2155_v60 = vld [vmem:[%s3427_s5 + $0x70] sm:$0xf] }
 0x34c   : > { %v1694_v23 = vld [vmem:[#allocation4 + $0x3] sm:$0xff]  ;;  %v1678_v46 = vmul.f32 %v2151_v30, %v1673_v28 }
 0x34d   : > { %v1715_v43 = vld [vmem:[#allocation4 + $0x4] sm:$0xff]  ;;  %v1662_v44 = vadd.f32 %v1657_v3, %v1636_v40  ;;  %v1699_v15 = vmul.f32 %v2156_v48, %v1694_v23  ;;  %v1633_v41 = vld [vmem:[#allocation4 + $0x10] sm:$0xff]  ;;  %v1663_v36 = vadd.f32 %v1658_v9, %v1637_v14 }
 0x34e   : > { %v1736_v56 = vld [vmem:[#allocation4 + $0x5] sm:$0xff]  ;;  %v1654_v55 = vld [vmem:[#allocation4 + $0x11] sm:$0xff]  ;;  %v1720_v21 = vmul.f32 %v2161_v2, %v1715_v43  ;;  %v1638_v62 = vmul.f32 %v1633_v41, %v1628_v1 }
 0x34f   : > { %v1757_v6 = vld [vmem:[#allocation4 + $0x6] sm:$0xff]  ;;  %v1683_v7 = vadd.f32 %v1678_v46, %v1662_v44  ;;  %v1659_v26 = vmul.f32 %v2148_v49, %v1654_v55  ;;  %v1675_v54 = vld [vmem:[#allocation4 + $0x12] sm:$0xff]  ;;  %v1741_v47 = vmul.f32 %v2166_v38, %v1736_v56 }
 0x350   : > { %v1674_v35 = vld [vmem:[#allocation4 + $0xa] sm:$0xff]  ;;  %v1696_v45 = vld [vmem:[#allocation4 + $0x13] sm:$0xff]  ;;  %v1762_v25 = vmul.f32 %v2171_v31, %v1757_v6  ;;  %v1680_v30 = vmul.f32 %v2153_v4, %v1675_v54 }
 0x351   : > { %v1695_v37 = vld [vmem:[#allocation4 + $0xb] sm:$0xff]  ;;  %v1679_v59 = vmul.f32 %v2152_v61, %v1674_v35  ;;  %v1717_v19 = vld [vmem:[#allocation4 + $0x14] sm:$0xff]  ;;  %v1704_v17 = vadd.f32 %v1699_v15, %v1683_v7  ;;  %v1664_v18 = vadd.f32 %v1659_v26, %v1638_v62  ;;  %v1701_v0 = vmul.f32 %v2158_v27, %v1696_v45  ;;  %v1635_v3 = vld [vmem:[#allocation4 + $0x20] sm:$0xf] }
 0x352   : > { %v1716_v22 = vld [vmem:[#allocation4 + $0xc] sm:$0xff]  ;;  %v1700_v48 = vmul.f32 %v2157_v11, %v1695_v37  ;;  %v1738_v57 = vld [vmem:[#allocation4 + $0x15] sm:$0xff]  ;;  %v1722_v2 = vmul.f32 %v2163_v50, %v1717_v19  ;;  %v1656_v43 = vld [vmem:[#allocation4 + $0x21] sm:$0xf]  ;;  %v1640_v44 = vmul.f32 %v1635_v3, %v1630_v20 }
 0x353   : > { %v1737_v13 = vld [vmem:[#allocation4 + $0xd] sm:$0xff]  ;;  %v1684_v39 = vadd.f32 %v1679_v59, %v1663_v36  ;;  %v1721_v28 = vmul.f32 %v2162_v32, %v1716_v22  ;;  %v2172_v1 = vld [vmem:[%s3427_s5 + $0xf8] sm:$0xff]  ;;  %v1725_v38 = vadd.f32 %v1720_v21, %v1704_v17  ;;  %v1685_v31 = vadd.f32 %v1680_v30, %v1664_v18  ;;  %v1677_v51 = vld [vmem:[#allocation4 + $0x22] sm:$0xf] }
 0x354   : > { %v2154_v16 = vld [vmem:[%s3427_s5 + $0x68] sm:$0xff]  ;;  %v1634_v40 = vld [vmem:[#allocation4 + $0x18] sm:$0xff]  ;;  %v1742_v49 = vmul.f32 %v2167_v8, %v1737_v13  ;;  %v1661_v56 = vmul.f32 %v2150_v29, %v1656_v43  ;;  %v2159_v6 = vld [vmem:[%s3427_s5 + $0x90] sm:$0xff]  ;;  %v1743_v32 = vmul.f32 %v2168_v63, %v1738_v57  ;;  %v1682_v21 = vmul.f32 %v2155_v60, %v1677_v51 }
 0x355   : > { %v1655_v23 = vld [vmem:[#allocation4 + $0x19] sm:$0xff]  ;;  %v1639_v61 = vmul.f32 %v1634_v40, %v1629_v52  ;;  %v1705_v4 = vadd.f32 %v1700_v48, %v1684_v39  ;;  %v1758_v11 = vld [vmem:[#allocation4 + $0xe] sm:$0xff]  ;;  %v1746_v9 = vadd.f32 %v1741_v47, %v1725_v38  ;;  %v1706_v27 = vadd.f32 %v1701_v0, %v1685_v31  ;;  %v1698_v55 = vld [vmem:[#allocation4 + $0x23] sm:$0xf] }
 0x356   : > { %v1676_v10 = vld [vmem:[#allocation4 + $0x1a] sm:$0xff]  ;;  %v1660_v46 = vmul.f32 %v2149_v58, %v1655_v23  ;;  %v1666_v7 = vadd.f32 %v1661_v56, %v1640_v44  ;;  %v1763_v45 = vmul.f32 %v2172_v1, %v1758_v11  ;;  %v1719_v29 = vld [vmem:[#allocation4 + $0x24] sm:$0xf]  ;;  %v2170_v30 = vld [vmem:[%s3427_s5 + $0xe8] sm:$0xf] }
 0x357   : > { %v1697_v14 = vld [vmem:[#allocation4 + $0x1b] sm:$0xff]  ;;  %v1681_v15 = vmul.f32 %v2154_v16, %v1676_v10  ;;  %v1726_v35 = vadd.f32 %v1721_v28, %v1705_v4  ;;  %v1767_v54 = vadd.f32 %v1762_v25, %v1746_v9  ;;  %v1727_v37 = vadd.f32 %v1722_v2, %v1706_v27  ;;  %v1740_v48 = vld [vmem:[#allocation4 + $0x25] sm:$0xf]  ;;  %v2175_v3 = vld [vmem:[%s3427_s5 + $0x110] sm:$0xf] }
 0x358   : > { %v2173_v50 = vld [vmem:[%s3427_s5 + $0x100] sm:$0xff]  ;;  %v2160_v41 = vld [vmem:[%s3427_s5 + $0x98] sm:$0xf]  ;;  %v1665_v52 = vadd.f32 %v1660_v46, %v1639_v61  ;;  %v1702_v20 = vmul.f32 %v2159_v6, %v1697_v14  ;;  %v1687_v59 = vadd.f32 %v1682_v21, %v1666_v7  ;;  %v2174_v0 = vld [vmem:[%s3427_s5 + $0x108] sm:$0xff]  ;;  %v1745_v61 = vmul.f32 %v2170_v30, %v1740_v48 }
 0x359   : > { %v1759_v8 = vld [vmem:[#allocation4 + $0x16] sm:$0xff]  ;;  %v2165_v58 = vld [vmem:[%s3427_s5 + $0xc0] sm:$0xf]  ;;  %v1747_v47 = vadd.f32 %v1742_v49, %v1726_v35  ;;  %v1703_v22 = vmul.f32 %v2160_v41, %v1698_v55  ;;  %v1772_v13 = vsub.f32 0.0, %v1767_v54  ;;  %v1748_v17 = vadd.f32 %v1743_v32, %v1727_v37  ;;  %v1761_v23 = vld [vmem:[#allocation4 + $0x26] sm:$0xf] }
 0x35a   : > { %v2164_v62 = vld [vmem:[%s3427_s5 + $0xb8] sm:$0xff]  ;;  %v1686_v36 = vadd.f32 %v1681_v15, %v1665_v52  ;;  %v2169_v19 = vld [vmem:[%s3427_s5 + $0xe0] sm:$0xff]  ;;  %v1764_v25 = vmul.f32 %v2173_v50, %v1759_v8  ;;  %v1724_v39 = vmul.f32 %v2165_v58, %v1719_v29  ;;  %v1766_v44 = vmul.f32 %v2175_v3, %v1761_v23 }
 0x35b   : > { %v1718_v26 = vld [vmem:[#allocation4 + $0x1c] sm:$0xff]  ;;  %v1768_v57 = vadd.f32 %v1763_v45, %v1747_v47  ;;  %v1708_v60 = vadd.f32 %v1703_v22, %v1687_v59  ;;  %v1777_v2 = vmul.f32 1.442695, %v1772_v13 }
 0x35c   : > { %v1739_v63 = vld [vmem:[#allocation4 + $0x1d] sm:$0xff]  ;;  %v1723_v18 = vmul.f32 %v2164_v62, %v1718_v26  ;;  %v1707_v16 = vadd.f32 %v1702_v20, %v1686_v36  ;;  %v1769_v1 = vadd.f32 %v1764_v25, %v1748_v17 }
 0x35d   : > { %v1760_v28 = vld [vmem:[#allocation4 + $0x1e] sm:$0xff]  ;;  %v1744_v40 = vmul.f32 %v2169_v19, %v1739_v63  ;;  %v1773_v38 = vsub.f32 0.0, %v1768_v57  ;;  %v1729_v49 = vadd.f32 %v1724_v39, %v1708_v60  ;;  %2315 = vpow2.f32 %v1777_v2 }
 0x35e   : > { %v1728_v31 = vadd.f32 %v1723_v18, %v1707_v16  ;;  %v1774_v43 = vsub.f32 0.0, %v1769_v1  ;;  %v1765_v10 = vmul.f32 %v2174_v0, %v1760_v28  ;;  %v1917_v0 = vld [vmem:[%s3428_s6] sm:$0xff]  ;;  %v1933_v1 = vpop.permute.xlu1 %1932 }
 0x35f   : > { %v1779_v51 = vmul.f32 1.442695, %v1773_v38  ;;  %v1750_v11 = vadd.f32 %v1745_v61, %v1729_v49 }
 0x360   : > { %v1749_v4 = vadd.f32 %v1744_v40, %v1728_v31  ;;  %v1781_v46 = vmul.f32 1.442695, %v1774_v43 }
 0x361   : > { %2317 = vpow2.f32 %v1779_v51  ;;  %v1771_v6 = vadd.f32 %v1766_v44, %v1750_v11 }
 0x362   : > { %v1770_v56 = vadd.f32 %v1765_v10, %v1749_v4  ;;  %2319 = vpow2.f32 %v1781_v46  ;;  %v1943_v10 = vpop.permute.xlu1 %1942 }
 0x363   : > { %v1776_v9 = vsub.f32 0.0, %v1771_v6 }
 0x364   : > { %v1775_v14 = vsub.f32 0.0, %v1770_v56 }
 0x365   : > { %v1785_v32 = vmul.f32 1.442695, %v1776_v9 }
 0x366   : > { %v1783_v27 = vmul.f32 1.442695, %v1775_v14 }
 0x368   : > { %2321 = vpow2.f32 %v1783_v27 }
 0x369   : > { %2323 = vpow2.f32 %v1785_v32 }
 0x36a   : > { %v2316_v50 = vpop.eup %2315 }
 0x36b   : > { %v1787_v15 = vadd.f32 1.0, %v2316_v50 }
 0x36d   : > { %2325 = vrcp.f32 %v1787_v15 }
 0x36e   : > { %v2318_v41 = vpop.eup %2317 }
 0x36f   : > { %v2320_v55 = vpop.eup %2319  ;;  %v1788_v35 = vadd.f32 1.0, %v2318_v41 }
 0x370   : > { %v1789_v8 = vadd.f32 1.0, %v2320_v55 }
 0x371   : > { %2327 = vrcp.f32 %v1788_v35 }
 0x372   : > { %2329 = vrcp.f32 %v1789_v8 }
 0x375   : > { %v2322_v52 = vpop.eup %2321 }
 0x376   : > { %v2324_v7 = vpop.eup %2323  ;;  %v1790_v21 = vadd.f32 1.0, %v2322_v52 }
 0x377   : > { %v1791_v62 = vadd.f32 1.0, %v2324_v7 }
 0x378   : > { %2331 = vrcp.f32 %v1790_v21 }
 0x379   : > { %2333 = vrcp.f32 %v1791_v62 }
 0x37a   : > { %v2326_v26 = vpop.eup %2325 }
 0x37b   : > { %2178 = vmatmul.mubr.msk.f32.vlgmr.msra.gmra.mxu0 %vm1615_vm1, %v2326_v26 }
 0x37c   : > { %1898 = vmatprep.mubr.f32.mxu0 %v3524_v5 }
 0x37e   : > { %v2328_v54 = vpop.eup %2327 }
 0x37f   : > { %v2330_v37 = vpop.eup %2329  ;;  %v1805_v45 = vrot.slane %v2328_v54, 6 }
 0x380   : > { %v1806_v20 = vrot.slane %v2330_v37, 6 }
 0x382   : > { %v1807_v58 = vsel %vm1804_vm12, %v1805_v45, %v1806_v20 }
 0x383   : > { %2179 = vmatmul.mubr.msk.f32.gmra.mxu0 %vm1615_vm1, %v1807_v58 }
 0x384   : > { %1904 = vmatprep.mubr.f32.mxu0 %v3524_v5 }
 0x385   : > { %v2332_v29 = vpop.eup %2331 }
 0x386   : > { %v2334_v47 = vpop.eup %2333  ;;  %v1811_v36 = vrot.slane %v2332_v29, 4 }
 0x387   : > { %v1812_v59 = vrot.slane %v2334_v47, 4 }
 0x389   : > { %v1813_v22 = vsel %vm1810_vm11, %v1811_v36, %v1812_v59 }
 0x38a   : > { %2180 = vmatmul.mubr.msk.f32.gmra.mxu0 %vm1615_vm1, %v1813_v22 }
 0x38b   : > { %2022 = vmatprep.mubr.f32.mxu0 %v3524_v5 }
 0x43b   : > { %v1894_v19 = vpop.f32.mrf.mxu0 }
 0x43c   : > { %v1911_v39 = vmul.f32 %v1894_v19, %v3245_v24  ;;  %v1920_v24 = vld [vmem:[%s3428_s6 + $0x18] sm:$0xff] }
 0x43d   : > { %v1896_v63 = vpop.f32.mrf.mxu0 }
 0x43e   : > { %v1912_v60 = vmul.f32 %v1896_v63, %v3243_v42  ;;  %v1919_v42 = vld [vmem:[%s3428_s6 + $0x10] sm:$0xff] }
 0x443   : > { %v1900_v13 = vpop.f32.mrf.mxu0 }
 0x444   : > { %v1913_v16 = vmul.f32 %v1900_v13, %v3251_v53  ;;  %v1928_v53 = vpop.permute.xlu0 %1927 }
 0x445   : > { %v1902_v17 = vpop.f32.mrf.mxu0 }
 0x446   : > { %v1914_v57 = vmul.f32 %v1902_v17, %v3249_v34  ;;  %v1918_v34 = vld [vmem:[%s3428_s6 + $0x8] sm:$0xff] }
 0x448   : > { %v1938_v38 = vpop.permute.xlu0 %1937 }
 0x44a   : > { %v1906_v25 = vpop.f32.mrf.mxu0 }
 0x44b   : > { %v1915_v48 = vmul.f32 %v1906_v25, %v3257_v12 }
 0x44c   : > { %v1908_v18 = vpop.f32.mrf.mxu0 }
 0x44d   : > { %v1916_v30 = vmul.f32 %v1908_v18, %v3255_v33 }
 0x44f   : > { %1984 = vmatprep.subr.mxu0 %v1916_v30 }
 0x450   : > { %1985 = vmatpush1.msra.mxu0 %v1915_v48 }
 0x451   : > { %1986 = vmatprep.subr.mxu0 %v1914_v57 }
 0x452   : > { %1987 = vmatpush1.msra.mxu0 %v1913_v16 }
 0x453   : > { %1988 = vmatprep.subr.mxu0 %v1912_v60 }
 0x454   : > { %1989 = vmatpush1.msra.mxu0 %v1911_v39 }
 0x455   : > { %2181 = vmatmul.mubr.msk.f32.vlgmr.msra.gmra.mxu0 %vm1945_vm9, %v1917_v0 }
 0x456   : > { %2028 = vmatprep.mubr.f32.mxu0 %v3524_v5 }
 0x459   : > { %2182 = vmatmul.mubr.msk.f32.gmra.mxu0 %vm1945_vm9, %v1918_v34 }
 0x45a   : > { %2034 = vmatprep.mubr.f32.mxu0 %v3524_v5 }
 0x45d   : > { %2183 = vmatmul.mubr.msk.f32.gmra.mxu0 %vm1945_vm9, %v1919_v42 }
 0x45e   : > { %2040 = vmatprep.mubr.f32.mxu0 %v3524_v5 }
 0x461   : > { %2184 = vmatmul.mubr.msk.f32.gmra.mxu0 %vm1945_vm9, %v1920_v24 }
 0x515   : > { %v2024_v33 = vpop.f32.mrf.mxu0 }
 0x516   : > { %v2025_v12 = vadd.f32 %v2024_v33, %v1928_v53 }
 0x517   : > { %v2026_v28 = vpop.f32.mrf.mxu0 }
 0x518   : > { %2047 = vst [vmem:[%s386_s14] sm:$0xff] %v2025_v12  ;;  %v2027_v2 = vadd.f32 %v2026_v28, %v1928_v53 }
 0x519   : > { %v2030_v40 = vpop.f32.mrf.mxu0 }
 0x51a   : > { %2048 = vst [vmem:[%s386_s14 + $0x8] sm:$0xff] %v2027_v2  ;;  %v2031_v5 = vadd.f32 %v2030_v40, %v1933_v1 }
 0x51b   : > { %v2032_v3 = vpop.f32.mrf.mxu0 }
 0x51c   : > { %2049 = vst [vmem:[%s386_s14 + $0x10] sm:$0xff] %v2031_v5  ;;  %v2033_v23 = vadd.f32 %v2032_v3, %v1933_v1 }
 0x51d   : > { %v2036_v31 = vpop.f32.mrf.mxu0 }
 0x51e   : > { %2050 = vst [vmem:[%s386_s14 + $0x18] sm:$0xff] %v2033_v23  ;;  %v2037_v49 = vadd.f32 %v2036_v31, %v1938_v38 }
 0x51f   : > { %v2038_v61 = vpop.f32.mrf.mxu0 }
 0x520   : > { %2051 = vst [vmem:[%s386_s14 + $0x20] sm:$0xff] %v2037_v49  ;;  %v2039_v43 = vadd.f32 %v2038_v61, %v1938_v38 }
 0x521   : > { %v2042_v51 = vpop.f32.mrf.mxu0 }
 0x522   : > { %2052 = vst [vmem:[%s386_s14 + $0x28] sm:$0xff] %v2039_v43  ;;  %v2043_v4 = vadd.f32 %v2042_v51, %v1943_v10 }
 0x523   : > { %v2044_v11 = vpop.f32.mrf.mxu0 }
 0x524   : > { %2053 = vst [vmem:[%s386_s14 + $0x30] sm:$0xff] %v2043_v4  ;;  %v2045_v44 = vadd.f32 %v2044_v11, %v1943_v10 }
 0x526   : > { %2054 = vst [vmem:[%s386_s14 + $0x38] sm:$0xff] %v2045_v44 }
 0x527 PF: > { %s21_s17 = sadd.s32 1, %s2341_s17  }
 0x528   : > { %p18_p4 = scmp.ge.s32.totalorder %s21_s17, 4  }
 0x52a   :  { %20 = sbr.rel (!%p18_p4) target bundleno = 1 (0x1), region = 123 }

</bundles_post_ra>
